<compile_context>
chip_gen: v6e
topology: v6e:2x2x1
jax: 0.10.0
libtpu: 0.0.40
codegen_flags: <defaults>
</compile_context>

<pallas_src>
import math

import jax
import jax.numpy as jnp
from jax import lax
from jax.experimental import pallas as pl
from jax.experimental.pallas import tpu as pltpu

D = 512  # fixed by W1, W2 = nn.Parameter(torch.randn(512, 512))
INV_SQRT_D = 1.0 / math.sqrt(D)


# ----------------------------------------------------------------------------
# Fused kernel: cmn attention + gate + gated fusion + decoder projection for one
# tile of B*T rows.
#   e_ref     : (tm, D)   embeddings tile (f32; elementwise math needs full precision)
#   m_ref     : (S, D)    memory matrix, bf16, resident across all grid steps
#   w1_ref    : (D, D)    W1, bf16, resident
#   w2_ref    : (D, D)    W2, bf16, resident
#   wd_ref    : (D, D)    decoder stand-in projection, bf16, resident
#   resp_ref  : (tm, D)   responses output tile (f32)
#   fused_ref : (tm, D)   gated-fusion output tile (f32)
#   dec_ref   : (tm, D)   decoder-projection output tile (f32)
# ----------------------------------------------------------------------------
def _cmn_gate_kernel(e_ref, m_ref, w1_ref, w2_ref, wd_ref,
                     resp_ref, fused_ref, dec_ref):
    e = e_ref[...]                                   # (tm, D) f32
    e_bf = e.astype(jnp.bfloat16)                    # MXU operand
    mem = m_ref[...]                                 # (S, D) bf16

    # scores = E @ M^T / sqrt(D)  (contract last dims directly; no XLU transpose of M)
    scores = lax.dot_general(
        e_bf, mem,
        dimension_numbers=(((1,), (1,)), ((), ())),
        preferred_element_type=jnp.float32,
    ) * INV_SQRT_D                                   # (tm, S) f32

    # softmax over the (small) memory axis, f32
    scores = scores - jnp.max(scores, axis=-1, keepdims=True)
    p = jnp.exp(scores)
    p = p * pl.reciprocal(jnp.sum(p, axis=-1, keepdims=True), approx=True)

    # responses = P @ M   (bf16 MXU inputs, f32 accumulation)
    r = jnp.dot(p.astype(jnp.bfloat16), mem,
                preferred_element_type=jnp.float32)  # (tm, D) f32

    # gate: z = E @ W1 + R @ W2  — two dots, no (tm, 2D) concat materialization
    z = jnp.dot(e_bf, w1_ref[...], preferred_element_type=jnp.float32)
    z = z + jnp.dot(r.astype(jnp.bfloat16), w2_ref[...],
                    preferred_element_type=jnp.float32)
    g = jax.nn.sigmoid(z)                            # G_I == G_F in the reference; compute once

    # fused = G_I * tanh(R + E) + G_F * E + R  with G_I == G_F == g
    fused = g * (jnp.tanh(r + e) + e) + r

    # decoder stand-in projection folded in: dec = tanh(fused @ Wd)
    dec = jnp.tanh(jnp.dot(fused.astype(jnp.bfloat16), wd_ref[...],
                           preferred_element_type=jnp.float32))

    resp_ref[...] = r.astype(resp_ref.dtype)
    fused_ref[...] = fused.astype(fused_ref.dtype)
    dec_ref[...] = dec.astype(dec_ref.dtype)


def _pick_tm(M, tm_max=256):
    """Row tile: multiple of 8, capped, and >= 2 tiles when possible (v7x dual TC)."""
    half = max(8, ((max(M, 1) + 1) // 2 + 7) // 8 * 8)
    return min(tm_max, half)


def cmn_gate_fuse_decode(embeddings, memory_matrix, w1, w2, wd, tm=None):
    """Returns (responses, fused, dec_out), each (B, T, D) float32."""
    B, T, _ = embeddings.shape
    S = memory_matrix.shape[0]
    M = B * T
    if tm is None:
        tm = _pick_tm(M)
    n_tiles = pl.cdiv(M, tm)
    Mp = n_tiles * tm

    e2 = embeddings.reshape(M, D).astype(jnp.float32)
    if Mp != M:
        e2 = jnp.pad(e2, ((0, Mp - M), (0, 0)))

    # MXU-only operands shipped as bf16 (halves weight DMA / VMEM residency).
    mem_bf = memory_matrix.astype(jnp.bfloat16)
    w1_bf = w1.astype(jnp.bfloat16)
    w2_bf = w2.astype(jnp.bfloat16)
    wd_bf = wd.astype(jnp.bfloat16)

    resp, fused, dec = pl.pallas_call(
        _cmn_gate_kernel,
        out_shape=(
            jax.ShapeDtypeStruct((Mp, D), jnp.float32),
            jax.ShapeDtypeStruct((Mp, D), jnp.float32),
            jax.ShapeDtypeStruct((Mp, D), jnp.float32),
        ),
        grid_spec=pltpu.PrefetchScalarGridSpec(
            num_scalar_prefetch=0,
            grid=(n_tiles,),
            in_specs=[
                pl.BlockSpec((tm, D), lambda i: (i, 0)),   # embeddings tile
                pl.BlockSpec((S, D), lambda i: (0, 0)),    # memory matrix, resident
                pl.BlockSpec((D, D), lambda i: (0, 0)),    # W1, resident
                pl.BlockSpec((D, D), lambda i: (0, 0)),    # W2, resident
                pl.BlockSpec((D, D), lambda i: (0, 0)),    # Wd, resident
            ],
            out_specs=[
                pl.BlockSpec((tm, D), lambda i: (i, 0)),
                pl.BlockSpec((tm, D), lambda i: (i, 0)),
                pl.BlockSpec((tm, D), lambda i: (i, 0)),
            ],
        ),
        compiler_params=pltpu.CompilerParams(
            dimension_semantics=("parallel",),
            vmem_limit_bytes=32 * 1024 * 1024,   # clears v5e's 16 MiB default scoped limit
        ),
    )(e2, mem_bf, w1_bf, w2_bf, wd_bf)

    resp = resp[:M].reshape(B, T, D)
    fused = fused[:M].reshape(B, T, D)
    dec = dec[:M].reshape(B, T, D)
    return resp, fused, dec


# ----------------------------------------------------------------------------
# Model wrapper.  encoder / decoder / src_embed / tgt_embed / cmn are injected
# submodules in the PyTorch code with unspecified architecture; deterministic
# stand-ins are used for them, while the Transformer-owned math (memory read,
# gate + fusion, plus the stand-in decoder projection) runs in the single fused
# Pallas kernel above.
# ----------------------------------------------------------------------------
class TransformerPallas:
    def __init__(self, key, vocab=32, n_mem=16):
        ks = jax.random.split(key, 6)
        # Parameters defined by Transformer itself:
        self.W1 = jax.random.normal(ks[0], (D, D), jnp.float32)
        self.W2 = jax.random.normal(ks[1], (D, D), jnp.float32)
        # TODO(synk): encoder/decoder/src_embed/tgt_embed/cmn are injected submodules
        # with no architecture given in this file; simple deterministic stand-ins below.
        self.src_emb_tbl = 0.02 * jax.random.normal(ks[2], (vocab, D), jnp.float32)
        self.tgt_emb_tbl = 0.02 * jax.random.normal(ks[3], (vocab, D), jnp.float32)
        self.memory_matrix = 0.02 * jax.random.normal(ks[4], (n_mem, D), jnp.float32)
        self.Wd = 0.02 * jax.random.normal(ks[5], (D, D), jnp.float32)

    def encode(self, src, src_mask):
        # stand-in: src_embed = table lookup, encoder = identity
        return jnp.take(self.src_emb_tbl, src, axis=0)

    def decode(self, memory, src_mask, tgt, tgt_mask, memory_matrix):
        embeddings = jnp.take(self.tgt_emb_tbl, tgt, axis=0)            # tgt_embed stand-in
        # One fused Pallas kernel: cmn attention + gate + gated fusion + decoder
        # projection — `fused` never round-trips HBM between XLA kernels.
        responses, fused, dec_out = cmn_gate_fuse_decode(
            embeddings, memory_matrix, self.W1, self.W2, self.Wd)
        return dec_out, responses, fused

    def __call__(self, src, tgt, src_mask, tgt_mask, memory_matrix):
        enc_outputs = self.encode(src, src_mask)
        return self.decode(enc_outputs, src_mask, tgt, tgt_mask, memory_matrix)


if __name__ == "__main__":
    key = jax.random.PRNGKey(0)
    kmod, ksrc, ktgt = jax.random.split(key, 3)

    B, T_src, T_tgt, vocab, n_mem = 2, 8, 8, 32, 16
    model = TransformerPallas(kmod, vocab=vocab, n_mem=n_mem)

    src = jax.random.randint(ksrc, (B, T_src), 0, vocab, dtype=jnp.int32)
    tgt = jax.random.randint(ktgt, (B, T_tgt), 0, vocab, dtype=jnp.int32)
    src_mask = jnp.ones((B, 1, T_src), jnp.float32)
    tgt_mask = jnp.ones((B, T_tgt, T_tgt), jnp.float32)

    dec_out, responses, fused = model(src, tgt, src_mask, tgt_mask, model.memory_matrix)
    jax.block_until_ready((dec_out, responses, fused))

    assert dec_out.shape == (B, T_tgt, D)
    assert responses.shape == (B, T_tgt, D)
    assert fused.shape == (B, T_tgt, D)
    assert bool(jnp.all(jnp.isfinite(dec_out)))
    assert bool(jnp.all(jnp.isfinite(responses)))
    assert bool(jnp.all(jnp.isfinite(fused)))
    print("KERNEL_OK")
</pallas_src>

<mosaic_0001>
module attributes {stable_mosaic.version = 11 : i64} {
  func.func @_cmn_gate_kernel(%arg0: i32, %arg1: memref<8x512xf32, #tpu.memory_space<vmem>>, %arg2: memref<16x512xbf16, #tpu.memory_space<vmem>>, %arg3: memref<512x512xbf16, #tpu.memory_space<vmem>>, %arg4: memref<512x512xbf16, #tpu.memory_space<vmem>>, %arg5: memref<512x512xbf16, #tpu.memory_space<vmem>>, %arg6: memref<8x512xf32, #tpu.memory_space<vmem>>, %arg7: memref<8x512xf32, #tpu.memory_space<vmem>>, %arg8: memref<8x512xf32, #tpu.memory_space<vmem>>) attributes {dimension_semantics = [#tpu.dimension_semantics<parallel>], iteration_bounds = array<i64: 2>, scalar_prefetch = 0 : i64, scratch_operands = 0 : i64, tpu.core_type = #tpu.core_type<tc>, window_params = [{transform_indices = @transform_0, window_bounds = array<i64: 8, 512>}, {pipeline_mode = #tpu.pipeline_mode<synchronous>, transform_indices = @transform_1, window_bounds = array<i64: 16, 512>}, {pipeline_mode = #tpu.pipeline_mode<synchronous>, transform_indices = @transform_2, window_bounds = array<i64: 512, 512>}, {pipeline_mode = #tpu.pipeline_mode<synchronous>, transform_indices = @transform_3, window_bounds = array<i64: 512, 512>}, {pipeline_mode = #tpu.pipeline_mode<synchronous>, transform_indices = @transform_4, window_bounds = array<i64: 512, 512>}, {transform_indices = @transform_5, window_bounds = array<i64: 8, 512>}, {transform_indices = @transform_6, window_bounds = array<i64: 8, 512>}, {transform_indices = @transform_7, window_bounds = array<i64: 8, 512>}]} {
    %c0 = arith.constant 0 : index
    %c0_0 = arith.constant 0 : index
    %0 = vector.load %arg1[%c0, %c0_0] : memref<8x512xf32, #tpu.memory_space<vmem>>, vector<8x512xf32>
    %1 = arith.truncf %0 : vector<8x512xf32> to vector<8x512xbf16>
    %c0_1 = arith.constant 0 : index
    %c0_2 = arith.constant 0 : index
    %2 = vector.load %arg2[%c0_1, %c0_2] : memref<16x512xbf16, #tpu.memory_space<vmem>>, vector<16x512xbf16>
    %cst = arith.constant dense<0.000000e+00> : vector<8x16xf32>
    %3 = tpu.matmul %1, %2, %cst {dimension_numbers = #tpu.dot_dimension_numbers<[1], [1], [0], [0], [0, 0, 1, 0], [], []>} : vector<8x512xbf16>, vector<16x512xbf16>, vector<8x16xf32> -> vector<8x16xf32>
    %cst_3 = arith.constant 0.0441941731 : f32
    %4 = vector.broadcast %cst_3 : f32 to vector<8x16xf32>
    %5 = arith.mulf %3, %4 : vector<8x16xf32>
    %cst_4 = arith.constant dense<0xFF800000> : vector<8xf32>
    %6 = vector.multi_reduction <maximumf>, %5, %cst_4 [1] : vector<8x16xf32> to vector<8xf32>
    %7 = vector.shape_cast %6 : vector<8xf32> to vector<8x1xf32>
    %8 = vector.broadcast %7 : vector<8x1xf32> to vector<8x16xf32>
    %9 = arith.subf %5, %8 : vector<8x16xf32>
    %10 = math.exp %9 : vector<8x16xf32>
    %cst_5 = arith.constant dense<0.000000e+00> : vector<8xf32>
    %11 = vector.multi_reduction <add>, %10, %cst_5 [1] : vector<8x16xf32> to vector<8xf32>
    %12 = vector.shape_cast %11 : vector<8xf32> to vector<8x1xf32>
    %13 = tpu.reciprocal %12 {approx = true} : vector<8x1xf32> -> vector<8x1xf32>
    %14 = vector.broadcast %13 : vector<8x1xf32> to vector<8x16xf32>
    %15 = arith.mulf %10, %14 : vector<8x16xf32>
    %16 = arith.truncf %15 : vector<8x16xf32> to vector<8x16xbf16>
    %cst_6 = arith.constant dense<0.000000e+00> : vector<8x512xf32>
    %17 = tpu.matmul %16, %2, %cst_6 {dimension_numbers = #tpu.dot_dimension_numbers<[1], [0], [0], [1], [0, 0, 1, 1], [], []>} : vector<8x16xbf16>, vector<16x512xbf16>, vector<8x512xf32> -> vector<8x512xf32>
    %c0_7 = arith.constant 0 : index
    %c0_8 = arith.constant 0 : index
    %18 = vector.load %arg3[%c0_7, %c0_8] : memref<512x512xbf16, #tpu.memory_space<vmem>>, vector<512x512xbf16>
    %cst_9 = arith.constant dense<0.000000e+00> : vector<8x512xf32>
    %19 = tpu.matmul %1, %18, %cst_9 {dimension_numbers = #tpu.dot_dimension_numbers<[1], [0], [0], [1], [0, 0, 1, 1], [], []>} : vector<8x512xbf16>, vector<512x512xbf16>, vector<8x512xf32> -> vector<8x512xf32>
    %20 = arith.truncf %17 : vector<8x512xf32> to vector<8x512xbf16>
    %c0_10 = arith.constant 0 : index
    %c0_11 = arith.constant 0 : index
    %21 = vector.load %arg4[%c0_10, %c0_11] : memref<512x512xbf16, #tpu.memory_space<vmem>>, vector<512x512xbf16>
    %cst_12 = arith.constant dense<0.000000e+00> : vector<8x512xf32>
    %22 = tpu.matmul %20, %21, %cst_12 {dimension_numbers = #tpu.dot_dimension_numbers<[1], [0], [0], [1], [0, 0, 1, 1], [], []>} : vector<8x512xbf16>, vector<512x512xbf16>, vector<8x512xf32> -> vector<8x512xf32>
    %23 = arith.addf %19, %22 : vector<8x512xf32>
    %24 = arith.negf %23 : vector<8x512xf32>
    %25 = math.exp %24 : vector<8x512xf32>
    %cst_13 = arith.constant 1.000000e+00 : f32
    %26 = vector.broadcast %cst_13 : f32 to vector<8x512xf32>
    %27 = arith.addf %26, %25 : vector<8x512xf32>
    %28 = arith.divf %26, %27 : vector<8x512xf32>
    %29 = arith.addf %17, %0 : vector<8x512xf32>
    %30 = math.tanh %29 : vector<8x512xf32>
    %31 = arith.addf %30, %0 : vector<8x512xf32>
    %32 = arith.mulf %28, %31 : vector<8x512xf32>
    %33 = arith.addf %32, %17 : vector<8x512xf32>
    %34 = arith.truncf %33 : vector<8x512xf32> to vector<8x512xbf16>
    %c0_14 = arith.constant 0 : index
    %c0_15 = arith.constant 0 : index
    %35 = vector.load %arg5[%c0_14, %c0_15] : memref<512x512xbf16, #tpu.memory_space<vmem>>, vector<512x512xbf16>
    %cst_16 = arith.constant dense<0.000000e+00> : vector<8x512xf32>
    %36 = tpu.matmul %34, %35, %cst_16 {dimension_numbers = #tpu.dot_dimension_numbers<[1], [0], [0], [1], [0, 0, 1, 1], [], []>} : vector<8x512xbf16>, vector<512x512xbf16>, vector<8x512xf32> -> vector<8x512xf32>
    %37 = math.tanh %36 : vector<8x512xf32>
    %c0_17 = arith.constant 0 : index
    %c0_18 = arith.constant 0 : index
    %38 = vector.load %arg6[%c0_17, %c0_18] : memref<8x512xf32, #tpu.memory_space<vmem>>, vector<8x512xf32>
    tpu.vector_store %arg6[%c0_17, %c0_18], %17 {strides = array<i32>} : memref<8x512xf32, #tpu.memory_space<vmem>>, vector<8x512xf32>,
    %c0_19 = arith.constant 0 : index
    %c0_20 = arith.constant 0 : index
    %39 = vector.load %arg7[%c0_19, %c0_20] : memref<8x512xf32, #tpu.memory_space<vmem>>, vector<8x512xf32>
    tpu.vector_store %arg7[%c0_19, %c0_20], %33 {strides = array<i32>} : memref<8x512xf32, #tpu.memory_space<vmem>>, vector<8x512xf32>,
    %c0_21 = arith.constant 0 : index
    %c0_22 = arith.constant 0 : index
    %40 = vector.load %arg8[%c0_21, %c0_22] : memref<8x512xf32, #tpu.memory_space<vmem>>, vector<8x512xf32>
    tpu.vector_store %arg8[%c0_21, %c0_22], %37 {strides = array<i32>} : memref<8x512xf32, #tpu.memory_space<vmem>>, vector<8x512xf32>,
    return
  }
  func.func @transform_0(%arg0: i32) -> (i32, i32) {
    %c0_i32 = arith.constant 0 : i32
    %c0_i32_0 = arith.constant 0 : i32
    return %arg0, %c0_i32 : i32, i32
  }
  func.func @transform_1(%arg0: i32) -> (i32, i32) {
    %c0_i32 = arith.constant 0 : i32
    %c0_i32_0 = arith.constant 0 : i32
    %c0_i32_1 = arith.constant 0 : i32
    return %c0_i32, %c0_i32_0 : i32, i32
  }
  func.func @transform_2(%arg0: i32) -> (i32, i32) {
    %c0_i32 = arith.constant 0 : i32
    %c0_i32_0 = arith.constant 0 : i32
    %c0_i32_1 = arith.constant 0 : i32
    return %c0_i32, %c0_i32_0 : i32, i32
  }
  func.func @transform_3(%arg0: i32) -> (i32, i32) {
    %c0_i32 = arith.constant 0 : i32
    %c0_i32_0 = arith.constant 0 : i32
    %c0_i32_1 = arith.constant 0 : i32
    return %c0_i32, %c0_i32_0 : i32, i32
  }
  func.func @transform_4(%arg0: i32) -> (i32, i32) {
    %c0_i32 = arith.constant 0 : i32
    %c0_i32_0 = arith.constant 0 : i32
    %c0_i32_1 = arith.constant 0 : i32
    return %c0_i32, %c0_i32_0 : i32, i32
  }
  func.func @transform_5(%arg0: i32) -> (i32, i32) {
    %c0_i32 = arith.constant 0 : i32
    %c0_i32_0 = arith.constant 0 : i32
    return %arg0, %c0_i32 : i32, i32
  }
  func.func @transform_6(%arg0: i32) -> (i32, i32) {
    %c0_i32 = arith.constant 0 : i32
    %c0_i32_0 = arith.constant 0 : i32
    return %arg0, %c0_i32 : i32, i32
  }
  func.func @transform_7(%arg0: i32) -> (i32, i32) {
    %c0_i32 = arith.constant 0 : i32
    %c0_i32_0 = arith.constant 0 : i32
    return %arg0, %c0_i32 : i32, i32
  }
}

</mosaic_0001>

<bundles_post_ra>
// kernel: tpu_custom_call.1
= control target key start
LH: loop header
LB: loop body
LE: loop exit
PB: predicated region body
PF: predicated region fallthrough
CT: control target
= control target key end

     0   :  { %s5499_s0 = inlined_call_operand.hbm [shape: f32[16,512], index: 0, kind: input, shape index: {}]   ;;  %s5500_s1 = inlined_call_operand.hbm [shape: bf16[16,512], index: 1, kind: input, shape index: {}]   ;;  %s5501_s2 = inlined_call_operand.hbm [shape: bf16[512,512], index: 2, kind: input, shape index: {}]   ;;  %s5502_s3 = inlined_call_operand.hbm [shape: bf16[512,512], index: 3, kind: input, shape index: {}]   ;;  %s5503_s4 = inlined_call_operand.hbm [shape: bf16[512,512], index: 4, kind: input, shape index: {}]   ;;  %s5504_s5 = inlined_call_operand.hbm [shape: f32[16,512], index: 5, kind: output, shape index: {0}]   ;;  %s5505_s6 = inlined_call_operand.hbm [shape: f32[16,512], index: 6, kind: output, shape index: {1}]   ;;  %s5506_s7 = inlined_call_operand.hbm [shape: f32[16,512], index: 7, kind: output, shape index: {2}]  }
   0x1   :  { %5512 = sst [smem:[#allocation20_spill]] %s5500_s1 }
   0x2   :  { %5513 = sst [smem:[#allocation21_spill]] %s5501_s2 }
   0x3   :  { %13 = vsyncpa [#allocation3], 0 }
   0x4   :  { %15 = vsyncpa [#allocation3 + $0x1], 0 }
   0x5   :  { %16 = vsyncpa [#allocation6], 0 }
   0x6   :  { %17 = vsyncpa [#allocation9], 0 }
   0x7   :  { %18 = vsyncpa [#allocation4], 0 }
   0x8   :  { %20 = vsyncpa [#allocation4 + $0x1], 0 }
   0x9   :  { %21 = vsyncpa [#allocation13], 0 }
   0xa   :  { %23 = vsyncpa [#allocation13 + $0x1], 0  ;;  %s5136_s24 = smov 0   ;;  %s5138_s25 = smov 0  }
   0xb   :  { %s5140_s26 = smov 0   ;;  %s5142_s27 = smov 0  }
   0xc LB: > { %s5085_s28 = smov [#allocation5]   ;;  %s5157_s30 = sadd.s32 4294967295, %s5083_s27   ;;  %s5083_s27 = sphi %s5142_s27, %s5536_s27   ;;  %s5079_s26 = sphi %s5140_s26, %s5535_s26   ;;  %s5075_s25 = sphi %s5138_s25, %s5534_s25   ;;  %s5071_s24 = sphi %s5136_s24, %s5533_s24  }
   0xd   : > { %s234_s29 = sshll.u32 %s5085_s28, 4  ;;  %p3670_p0 = scmp.ge.s32.totalorder %s5083_s27, 1  ;;  %s235_s29 = int_to_ptr.vmem [resolvable:$true] %s234_s29 }
   0xe   : > { %p5508_p1 = scmp.eq.s32.totalorder %s5157_s30, 0  ;;  %p222_p2 = scmp.lt.s32.totalorder %s5083_s27, 3 }
   0xf   : > { %s5086_s9 = smov [#allocation8]   ;;  %s5087_s12 = smov [#allocation7]  }
  0x10   : > { %p5162_p3 = pnand %p3670_p0, %p222_p2  ;;  %s260_s10 = sshll.u32 %s5086_s9, 4  ;;  %s5175_s10 = int_to_ptr.vmem [resolvable:$true] %s260_s10 }
  0x11   : > { %s247_s13 = sshll.u32 %s5087_s12, 4  ;;  %s4834_s14 = scalar_lea.vmem %s235_s29, 512  ;;  %s5177_s13 = int_to_ptr.vmem [resolvable:$true] %s247_s13 }
  0x12   : > { %s5514_s8 = scalar_select %p5162_p3, 1, 0 }
  0x13   : > { %p4121_p5 = pneg %p5162_p3  ;;  %p4835_p8 = scmp.ne.s32.totalorder %s235_s29, %s4834_s14 }
  0x14   : > { %p4842_p11 = scmp.lt.s32.totalorder %s235_s29, %s235_s29  ;;  %p4843_p12 = scmp.lt.s32.totalorder %s4834_s14, %s4834_s14 }
  0x15   : > { %p5171_p6 = pnand %p4121_p5, %p5508_p1 }
  0x16   : > { %p4844_p13 = por %p4843_p12, %p4842_p11 }
  0x17   : > { %p4825_p7 = pneg %p5171_p6 }
  0x19   : > { %p4837_p9 = pnand %p4835_p8, %p4825_p7 }
  0x1b   : > { %p4838_p10 = pneg %p4837_p9 }
  0x1d   : > { %p4845_p0 = pnand %p4844_p13, %p4838_p10 }
  0x1f   : > { %4848 = shalt.err (!%p4845_p0)
}
  0x20   : > { %s5088_s15 = smov 256   ;;  %s5089_s16 = smov 16  }
  0x21   : > { %s5516_s1 = sld [smem:[#allocation20_spill]]  ;;  %s4860_s19 = scalar_lea.vmem %s5175_s10, 16384 }
  0x22   : > { %p4861_p2 = scmp.ne.s32.totalorder %s5175_s10, %s4860_s19  ;;  %p4868_p9 = scmp.lt.s32.totalorder %s5175_s10, %s5175_s10 }
  0x23   : > { %p4869_p10 = scmp.lt.s32.totalorder %s4860_s19, %s4860_s19 }
  0x24   : > { %p4863_p5 = pnand %p4861_p2, %p4825_p7 }
  0x25   : > { %p4870_p11 = por %p4869_p10, %p4868_p9 }
  0x26   : > { %p4864_p8 = pneg %p4863_p5 }
  0x27   : > { %4124 = dma.hbm_to_vmem [thread:$0]  (!%p5171_p6), %s5516_s1, 512, %s235_s29, [#allocation6], %s5088_s15, %s5088_s15, %s5089_s16  }
  0x28   : > { %p4871_p12 = pnand %p4870_p11, %p4864_p8 }
  0x2a   : > { %4874 = shalt.err (!%p4871_p12)
}
  0x2b   : > { %4130 = dma.hbm_to_vmem [thread:$0]  (!%p5171_p6), %s5502_s3, 16384, %s5175_s10, [#allocation9], %s5088_s15, %s5088_s15, %s5089_s16  }
  0x2c   : > { %s4886_s22 = scalar_lea.vmem %s5177_s13, 16384  ;;  %p4894_p5 = scmp.lt.s32.totalorder %s5177_s13, %s5177_s13 }
  0x2d   : > { %p4887_p13 = scmp.ne.s32.totalorder %s5177_s13, %s4886_s22  ;;  %p4895_p8 = scmp.lt.s32.totalorder %s4886_s22, %s4886_s22 }
  0x2f   : > { %p4889_p0 = pnand %p4887_p13, %p4825_p7  ;;  %p4896_p9 = por %p4895_p8, %p4894_p5 }
  0x31   : > { %p4890_p2 = pneg %p4889_p0 }
  0x33   : > { %p4897_p10 = pnand %p4896_p9, %p4890_p2 }
  0x35   : > { %4900 = shalt.err (!%p4897_p10)
}
  0x36   : > { %s5517_s2 = sld [smem:[#allocation21_spill]]  ;;  %s5090_s29 = smov [#allocation10]  }
  0x37   : > { %s273_s9 = sshll.u32 %s5090_s29, 4  ;;  %s274_s9 = int_to_ptr.vmem [resolvable:$true] %s273_s9 }
  0x38   : > { %s4912_s10 = scalar_lea.vmem %s274_s9, 16384  ;;  %p4920_p0 = scmp.lt.s32.totalorder %s274_s9, %s274_s9 }
  0x39   : > { %p4913_p11 = scmp.ne.s32.totalorder %s274_s9, %s4912_s10  ;;  %p4921_p2 = scmp.lt.s32.totalorder %s4912_s10, %s4912_s10 }
  0x3b   : > { %p4915_p12 = pnand %p4913_p11, %p4825_p7  ;;  %p4922_p5 = por %p4921_p2, %p4920_p0 }
  0x3c   : > { %4127 = dma.hbm_to_vmem [thread:$0]  (!%p5171_p6), %s5517_s2, 16384, %s5177_s13, [#allocation6], %s5088_s15, %s5088_s15, %s5089_s16  }
  0x3d   : > { %p4916_p13 = pneg %p4915_p12 }
  0x3f   : > { %p4923_p8 = pnand %p4922_p5, %p4916_p13 }
  0x41   : > { %4926 = shalt.err (!%p4923_p8)
}
  0x42   : > { %4133 = dma.hbm_to_vmem [thread:$0]  (!%p5171_p6), %s5503_s4, 16384, %s274_s9, [#allocation9], %s5088_s15, %s5088_s15, %s5089_s16  }
  0x43   : > { %s5507_s11 = sadd.s32 4294967294, %s5083_s27   ;;  %s5237_s14 = sadd.s32 1, %s5083_s27  }
  0x44   : > { %s33_s17 = ssub.s32 %s5083_s27, %s5237_s14  ;;  %s36_s18 = sadd.s32 1, %s5079_s26 }
  0x45   : > { %p34_p7 = scmp.eq.s32.totalorder %s33_s17, 0  ;;  %p43_p9 = scmp.ne.s32.totalorder %s5079_s26, %s5075_s25 }
  0x46   : > { %p44_p10 = scmp.eq.s32.totalorder %s5083_s27, 0  ;;  %p49_p11 = scmp.ne.s32.totalorder %s5075_s25, %s5071_s24 }
  0x47   : > { %s5248_s19 = scalar_select %p34_p7, %s5079_s26, %s36_s18  }
  0x48   : > { %p5250_p12 = por %p44_p10, %p43_p9  ;;  %p5256_p6 = por %p5508_p1, %p49_p11 }
  0x49   : > { %p157_p13 = scmp.eq.s32.totalorder %s5157_s30, 1  ;;  %p163_p0 = scmp.eq.s32.totalorder %s5507_s11, 1 }
  0x4a   : > { %s5519_s15 = scalar_select %p5256_p6, 1, 0 }
  0x4b   : > { %p4152_p2 = scmp.lt.s32.totalorder %s5083_s27, 2  ;;  %s287_s16 = sand.u32 1, %s5079_s26  }
  0x4c   : > { %p5265_p5 = por %p157_p13, %p43_p9  ;;  %p5269_p8 = por %p163_p0, %p49_p11 }
  0x4d   : > { %s3676_s23 = sshll.u32 %s287_s16, 5  ;;  %s4093_s28 = sshll.u32 %s5083_s27, 9 }
  0x4e   : > { %s5520_s21 = scalar_select %p5265_p5, 1, 0 }
  0x4f   : > { %s5521_s22 = scalar_select %p5269_p8, 1, 0 }
  0x50   : > { %s5277_s10 = scalar_lea.hbm %s5499_s0, %s4093_s28  ;;  %s291_s12 = scalar_lea.vmem [#allocation2], %s3676_s23 }
  0x51   : > { %s299_s13 = sshll.u32 %s291_s12, 4  ;;  %p5281_p7 = pnand %p4152_p2, %p5250_p12  ;;  %s300_s13 = int_to_ptr.vmem [resolvable:$true] %s299_s13 }
  0x52   : > { %s288_s18 = scalar_lea.sflag [#allocation3], %s287_s16  ;;  %s4927_s11 = scalar_lea.hbm %s5277_s10, 512 }
  0x53   : > { %p4928_p9 = scmp.ne.s32.totalorder %s5277_s10, %s4927_s11  ;;  %p4929_p10 = pneg %p5281_p7 }
  0x54   : > { %s4932_s9 = scalar_lea.hbm %s5499_s0, 1024  ;;  %p4933_p0 = scmp.lt.s32.totalorder %s5277_s10, %s5499_s0 }
  0x55   : > { %p4930_p11 = pnand %p4929_p10, %p4928_p9  ;;  %p4934_p12 = scmp.lt.s32.totalorder %s4932_s9, %s4927_s11 }
  0x57   : > { %p4931_p13 = pneg %p4930_p11  ;;  %p4935_p2 = por %p4934_p12, %p4933_p0 }
  0x59   : > { %p4936_p4 = pnand %p4935_p2, %p4931_p13 }
  0x5b   : > { %4939 = shalt.err (!%p4936_p4)
}
  0x5c   : > { %s4940_s20 = scalar_lea.vmem %s300_s13, 512  ;;  %s5091_s16 = smov [#allocation2]  }
  0x5d   : > { %p4941_p1 = scmp.ne.s32.totalorder %s300_s13, %s4940_s20  ;;  %s4945_s1 = sshll.u32 %s5091_s16, 4  ;;  %s4946_s1 = int_to_ptr.vmem [resolvable:$false] %s4945_s1 }
  0x5e   : > { %s4947_s2 = scalar_lea.vmem %s4946_s1, 1024  ;;  %p4948_p9 = scmp.lt.s32.totalorder %s300_s13, %s4946_s1 }
  0x5f   : > { %p4943_p8 = pnand %p4941_p1, %p4929_p10  ;;  %p4949_p11 = scmp.lt.s32.totalorder %s4947_s2, %s4940_s20 }
  0x61   : > { %p4944_p5 = pneg %p4943_p8  ;;  %p4950_p6 = por %p4949_p11, %p4948_p9 }
  0x63   : > { %p4951_p3 = pnand %p4950_p6, %p4944_p5 }
  0x65   : > { %4954 = shalt.err (!%p4951_p3)
}
  0x66   : > { %4137 = dma.hbm_to_vmem [thread:$0]  (!%p5281_p7), %s5277_s10, 512, %s300_s13, %s288_s18  }
  0x67   : > { %p5523_p13 = scmp.ne.s32.totalorder %s5514_s8, 0 }
  0x68   : > { %s5302_s11 = sand.u32 (!%p5523_p13), 1, %s5075_s25   ;;  %p5524_p1 = scmp.ne.s32.totalorder (!%p5523_p13), %s5519_s15, 0 }
  0x69   : > { %308 = sbr.rel (%p5523_p13) target bundleno = 1553 (0x611), region = 40  ;;  %s5305_s28 = sshll.u32 (!%p5523_p13), %s5302_s11, 5 }
  0x6a   : > { %s311_s1 = scalar_lea.sflag (!%p5523_p13), [#allocation3], %s5302_s11  ;;  %s5309_s2 = scalar_lea.vmem (!%p5523_p13), [#allocation2], %s5305_s28 }
  0x6e   : > { %5050 = dma.done.wait (%p5524_p1), %s311_s1, 512  }
  0x6f   : > { %5052 = vsyncadd (%p5524_p1), %s311_s1, 4294966784  ;;  %p5525_p3 = scmp.eq.s32.totalorder %s5157_s30, 0 }
  0x71   : > { %5054 = dma.done.wait (%p5525_p3), [#allocation6], 16896   ;;  %p5526_p4 = pmov %p5525_p3 }
  0x72   : > { %p5527_p6 = pmov %p5525_p3 }
  0x73   : > { %5056 = vsyncadd (%p5526_p4), [#allocation6], 4294950400 }
  0x74   : > { %5058 = dma.done.wait (%p5527_p6), [#allocation9], 32768   ;;  %p5528_p5 = pmov %p5525_p3 }
  0x75   : > { %v4197_v0 = vld [vmem:[#allocation5 + $0x4] ss:$16 sps:$4 sm:$0xff]   ;;  %v4199_v1 = vld [vmem:[#allocation5 + $0xc] ss:$16 sps:$4 sm:$0xff]   ;;  %v4201_v2 = vld [vmem:[#allocation5] ss:$16 sps:$4 sm:$0xff]  }
  0x76   : > { %5060 = vsyncadd (%p5528_p5), [#allocation9], 4294934528  ;;  %418 = vmatprep.subr.bf16.mxu0 %v4197_v0  ;;  %v4202_v3 = vld [vmem:[#allocation5 + $0x8] ss:$16 sps:$4 sm:$0xff]   ;;  %458 = vmatprep.subr.bf16.mxu1 %v4199_v1  ;;  %v372_v7 = vld [vmem:[%s5309_s2] sm:$0xff]  ;;  %vm485_vm0 = vcmask 130048  }
  0x77   : > { %v373_v4 = vld [vmem:[%s5309_s2 + $0x8] sm:$0xff]  ;;  %v375_v6 = vld [vmem:[%s5309_s2 + $0x18] sm:$0xff]  ;;  %v374_v8 = vld [vmem:[%s5309_s2 + $0x10] sm:$0xff]  ;;  %419 = vmatpush1.bf16.xpose.msra.mxu0 %v4201_v2  ;;  %459 = vmatpush1.bf16.xpose.msra.mxu1 %v4202_v3  ;;  %v5333_v10 = vpack.c.bf16 %v372_v7, %v372_v7  ;;  %v5092_v28 = vmov 0   ;;  %s5344_s8 = scalar_lea.vmem [#allocation11], %s5305_s28  ;;  %s5381_s15 = scalar_lea.vmem [#allocation12], %s5305_s28 }
  0x78   : > { %v5324_v5 = vpack.c.bf16 %v373_v4, %v373_v4  ;;  %v5329_v9 = vpack.c.bf16 %v375_v6, %v375_v6  ;;  %515 = vmatprep.subr.bf16.mxu0 %v4197_v0  ;;  %556 = vmatprep.subr.bf16.mxu1 %v4199_v1  ;;  %v5335_v11 = vpack.c.bf16 %v374_v8, %v374_v8  ;;  %v4205_v29 = vld [vmem:[#allocation8 + $0xe4] ss:$16 sps:$4 sm:$0xff]   ;;  %v4203_v34 = vld [vmem:[#allocation8 + $0xe0] ss:$16 sps:$4 sm:$0xff]   ;;  %s3452_s10 = sand.u32 1, %s5157_s30   ;;  %s5407_s13 = sshll.u32 %s5157_s30, 9 }
  0x79   : > { %v4208_v30 = vld [vmem:[#allocation8 + $0x2e4] ss:$16 sps:$4 sm:$0xff]   ;;  %v4206_v35 = vld [vmem:[#allocation8 + $0x2e0] ss:$16 sps:$4 sm:$0xff]   ;;  %s5413_s29 = scalar_lea.hbm %s5505_s6, %s5407_s13  ;;  %s3486_s9 = sshll.u32 %s5381_s15, 4  ;;  %s3487_s9 = int_to_ptr.vmem [resolvable:$true] %s3486_s9 }
  0x7a   : > { %436 = vmatprep.mubr.bf16.mxu0 %v5324_v5  ;;  %476 = vmatprep.mubr.bf16.mxu1 %v5329_v9  ;;  %v4211_v37 = vld [vmem:[#allocation8 + $0xc4] ss:$16 sps:$4 sm:$0xff]   ;;  %v4209_v39 = vld [vmem:[#allocation8 + $0xc0] ss:$16 sps:$4 sm:$0xff]   ;;  %s5420_s20 = scalar_lea.hbm %s5504_s5, %s5407_s13  ;;  %s5422_s16 = scalar_lea.sflag [#allocation13], %s3452_s10 }
  0x7b   : > { %v4214_v38 = vld [vmem:[#allocation8 + $0x2c4] ss:$16 sps:$4 sm:$0xff]   ;;  %v4212_v40 = vld [vmem:[#allocation8 + $0x2c0] ss:$16 sps:$4 sm:$0xff]   ;;  %s4955_s1 = scalar_lea.vmem %s3487_s9, 512  ;;  %p5529_p7 = scmp.ne.s32.totalorder %s5520_s21, 0 }
  0x7c   : > { %v4217_v41 = vld [vmem:[#allocation8 + $0xa4] ss:$16 sps:$4 sm:$0xff]   ;;  %v4215_v43 = vld [vmem:[#allocation8 + $0xa0] ss:$16 sps:$4 sm:$0xff]   ;;  %p4956_p8 = scmp.ne.s32.totalorder %s3487_s9, %s4955_s1  ;;  %s5093_s30 = smov [#allocation12]  }
  0x7d   : > { %v4220_v42 = vld [vmem:[#allocation8 + $0x2a4] ss:$16 sps:$4 sm:$0xff]   ;;  %v4218_v44 = vld [vmem:[#allocation8 + $0x2a0] ss:$16 sps:$4 sm:$0xff]  }
  0x7e   : > { %437 = vmatmul.mubr.bf16.vlgmr.msra.gmra.mxu0 %v5333_v10  ;;  %477 = vmatmul.mubr.bf16.vlgmr.msra.gmra.mxu1 %v5335_v11  ;;  %v4223_v45 = vld [vmem:[#allocation8 + $0x84] ss:$16 sps:$4 sm:$0xff]   ;;  %v4221_v47 = vld [vmem:[#allocation8 + $0x80] ss:$16 sps:$4 sm:$0xff]   ;;  %p4957_p10 = pnand %p4956_p8, %p5529_p7 }
  0x7f   : > { %516 = vmatpush1.bf16.msra.mxu0 %v4201_v2  ;;  %557 = vmatpush1.bf16.msra.mxu1 %v4202_v3  ;;  %v4226_v46 = vld [vmem:[#allocation8 + $0x284] ss:$16 sps:$4 sm:$0xff]   ;;  %v4224_v48 = vld [vmem:[#allocation8 + $0x280] ss:$16 sps:$4 sm:$0xff]  }
  0x80   : > { %533 = vmatprep.mubr.bf16.mxu0 %v5092_v28  ;;  %574 = vmatprep.mubr.bf16.mxu1 %v5092_v28  ;;  %v4229_v49 = vld [vmem:[#allocation8 + $0x64] ss:$16 sps:$4 sm:$0xff]   ;;  %v4227_v51 = vld [vmem:[#allocation8 + $0x60] ss:$16 sps:$4 sm:$0xff]   ;;  %p4958_p0 = pneg %p4957_p10 }
  0x81   : > { %1483 = vmatprep.subr.bf16.mxu0 %v4205_v29  ;;  %1524 = vmatprep.subr.bf16.mxu1 %v4208_v30  ;;  %v4232_v50 = vld [vmem:[#allocation8 + $0x264] ss:$16 sps:$4 sm:$0xff]   ;;  %v4230_v52 = vld [vmem:[#allocation8 + $0x260] ss:$16 sps:$4 sm:$0xff]  }
  0x82   : > { %v4235_v53 = vld [vmem:[#allocation8 + $0x44] ss:$16 sps:$4 sm:$0xff]   ;;  %v4233_v55 = vld [vmem:[#allocation8 + $0x40] ss:$16 sps:$4 sm:$0xff]  }
  0x83   : > { %v4238_v54 = vld [vmem:[#allocation8 + $0x244] ss:$16 sps:$4 sm:$0xff]   ;;  %v4236_v56 = vld [vmem:[#allocation8 + $0x240] ss:$16 sps:$4 sm:$0xff]  }
  0x84   : > { %v4241_v57 = vld [vmem:[#allocation8 + $0x24] ss:$16 sps:$4 sm:$0xff]   ;;  %v4239_v59 = vld [vmem:[#allocation8 + $0x20] ss:$16 sps:$4 sm:$0xff]  }
  0x85   : > { %v4244_v58 = vld [vmem:[#allocation8 + $0x224] ss:$16 sps:$4 sm:$0xff]   ;;  %v4242_v60 = vld [vmem:[#allocation8 + $0x220] ss:$16 sps:$4 sm:$0xff]  }
  0x86   : > { %v4247_v61 = vld [vmem:[#allocation8 + $0x4] ss:$16 sps:$4 sm:$0xff]   ;;  %v4245_v63 = vld [vmem:[#allocation8] ss:$16 sps:$4 sm:$0xff]  }
  0x87   : > { %v4250_v62 = vld [vmem:[#allocation8 + $0x204] ss:$16 sps:$4 sm:$0xff]   ;;  %v4248_v0 = vld [vmem:[#allocation8 + $0x200] ss:$16 sps:$4 sm:$0xff]  }
  0x88   : > { %v4253_v1 = vld [vmem:[#allocation8 + $0x1e4] ss:$16 sps:$4 sm:$0xff]   ;;  %v4251_v3 = vld [vmem:[#allocation8 + $0x1e0] ss:$16 sps:$4 sm:$0xff]  }
  0x89   : > { %v4256_v2 = vld [vmem:[#allocation8 + $0x3e4] ss:$16 sps:$4 sm:$0xff]   ;;  %v4254_v4 = vld [vmem:[#allocation8 + $0x3e0] ss:$16 sps:$4 sm:$0xff]  }
  0x8a   : > { %v4259_v6 = vld [vmem:[#allocation8 + $0x1c4] ss:$16 sps:$4 sm:$0xff]   ;;  %v4257_v8 = vld [vmem:[#allocation8 + $0x1c0] ss:$16 sps:$4 sm:$0xff]  }
  0x8b   : > { %v4262_v7 = vld [vmem:[#allocation8 + $0x3c4] ss:$16 sps:$4 sm:$0xff]   ;;  %v4284_v28 = vld [vmem:[#allocation8 + $0x340] ss:$16 sps:$4 sm:$0xff]  }
  0x8c   : > { %v4289_v29 = vld [vmem:[#allocation8 + $0x124] ss:$16 sps:$4 sm:$0xff]  }
  0x8d   : > { %v4292_v30 = vld [vmem:[#allocation8 + $0x324] ss:$16 sps:$4 sm:$0xff]  }
 0x13e   : > { %v438_v12 = vpop.f32.mrf.mxu0  ;;  %v478_v13 = vpop.f32.mrf.mxu1 }
 0x13f   : > { %v479_v14 = vadd.f32 %v478_v13, %v438_v12  ;;  %v4260_v12 = vld [vmem:[#allocation8 + $0x3c0] ss:$16 sps:$4 sm:$0xff]   ;;  %v4265_v13 = vld [vmem:[#allocation8 + $0x1a4] ss:$16 sps:$4 sm:$0xff]  }
 0x140   : > { %v440_v15 = vpop.f32.mrf.mxu0  ;;  %v480_v16 = vpop.f32.mrf.mxu1 }
 0x141   : > { %v484_v17 = vmul.f32 0.044194173, %v479_v14  ;;  %v4268_v14 = vld [vmem:[#allocation8 + $0x3a4] ss:$16 sps:$4 sm:$0xff]   ;;  %v4263_v15 = vld [vmem:[#allocation8 + $0x1a0] ss:$16 sps:$4 sm:$0xff]  }
 0x142   : > { %v441_v18 = vpop.f32.mrf.mxu0  ;;  %v481_v19 = vpop.f32.mrf.mxu1  ;;  %v4266_v16 = vld [vmem:[#allocation8 + $0x3a0] ss:$16 sps:$4 sm:$0xff]  }
 0x143   : > { %v486_v20 = vsel %vm485_vm0, %v484_v17, -inf  ;;  %v4274_v18 = vld [vmem:[#allocation8 + $0x384] ss:$16 sps:$4 sm:$0xff]   ;;  %v4269_v19 = vld [vmem:[#allocation8 + $0x180] ss:$16 sps:$4 sm:$0xff]  }
 0x144   : > { %v482_v21 = vpop.f32.mrf.mxu1  ;;  %487 = vmax.xlane.f32.xlu0 %v486_v20  ;;  %v442_v22 = vpop.f32.mrf.mxu0  ;;  %v4272_v20 = vld [vmem:[#allocation8 + $0x380] ss:$16 sps:$4 sm:$0xff]  }
 0x145   : > { %v4277_v21 = vld [vmem:[#allocation8 + $0x164] ss:$16 sps:$4 sm:$0xff]  }
 0x146   : > { %v4280_v22 = vld [vmem:[#allocation8 + $0x364] ss:$16 sps:$4 sm:$0xff]  }
 0x1cd   : > { %v488_v23 = vpop.xlane.xlu0 %487 }
 0x1ce   : > { %v489_v24 = vsub.f32 %v484_v17, %v488_v23  ;;  %v4271_v17 = vld [vmem:[#allocation8 + $0x184] ss:$16 sps:$4 sm:$0xff]   ;;  %v4275_v23 = vld [vmem:[#allocation8 + $0x160] ss:$16 sps:$4 sm:$0xff]  }
 0x1d0   : > { %v490_v25 = vmul.f32 1.442695, %v489_v24  ;;  %v4278_v24 = vld [vmem:[#allocation8 + $0x360] ss:$16 sps:$4 sm:$0xff]  }
 0x1d2   : > { %4779 = vpow2.f32 %v490_v25  ;;  %v4283_v25 = vld [vmem:[#allocation8 + $0x144] ss:$16 sps:$4 sm:$0xff]  }
 0x1df   : > { %v4780_v26 = vpop.eup %4779 }
 0x1e0   : > { %v492_v27 = vsel %vm485_vm0, %v4780_v26, 0.0 }
 0x1e1   : > { %493 = vadd.xlane.f32.xlu0 %v492_v27  ;;  %v4281_v27 = vld [vmem:[#allocation8 + $0x140] ss:$16 sps:$4 sm:$0xff]  }
 0x26a   : > { %v494_v31 = vpop.xlane.xlu0 %493 }
 0x26b   : > { %4781 = vrcp.f32 %v494_v31  ;;  %v4287_v31 = vld [vmem:[#allocation8 + $0x120] ss:$16 sps:$4 sm:$0xff]  }
 0x278   : > { %v4782_v32 = vpop.eup %4781 }
 0x279   : > { %v496_v33 = vmul.f32 %v4782_v32, %v4780_v26  ;;  %v4286_v26 = vld [vmem:[#allocation8 + $0x344] ss:$16 sps:$4 sm:$0xff]   ;;  %v4290_v32 = vld [vmem:[#allocation8 + $0x320] ss:$16 sps:$4 sm:$0xff]  }
 0x27b   : > { %v497_v36 = vpack.c.bf16 %v496_v33, %v496_v33  ;;  %v4295_v33 = vld [vmem:[#allocation8 + $0x104] ss:$16 sps:$4 sm:$0xff]  }
 0x27d   : > { %3692 = vmatmul.mubr.msk.bf16.vlgmr.msra.gmra.mxu0 %vm485_vm0, %v497_v36  ;;  %3693 = vmatmul.mubr.msk.bf16.vlgmr.msra.gmra.mxu1 %vm485_vm0, %v497_v36  ;;  %v4296_v36 = vld [vmem:[#allocation8 + $0x300] ss:$16 sps:$4 sm:$0xff]  }
 0x27e   : > { %1484 = vmatpush1.bf16.msra.mxu0 %v4203_v34  ;;  %1525 = vmatpush1.bf16.msra.mxu1 %v4206_v35  ;;  %v4298_v34 = vld [vmem:[#allocation8 + $0x304] ss:$16 sps:$4 sm:$0xff]   ;;  %v4293_v35 = vld [vmem:[#allocation8 + $0x100] ss:$16 sps:$4 sm:$0xff]  }
 0x27f   : > { %1485 = vmatprep.subr.bf16.mxu0 %v4211_v37  ;;  %1526 = vmatprep.subr.bf16.mxu1 %v4214_v38  ;;  %v4301_v37 = vld [vmem:[#allocation8 + $0xec] ss:$16 sps:$4 sm:$0xff]  }
 0x280   : > { %v4304_v38 = vld [vmem:[#allocation8 + $0x2ec] ss:$16 sps:$4 sm:$0xff]  }
 0x282   : > { %1486 = vmatpush1.bf16.msra.mxu0 %v4209_v39  ;;  %1527 = vmatpush1.bf16.msra.mxu1 %v4212_v40 }
 0x283   : > { %1487 = vmatprep.subr.bf16.mxu0 %v4217_v41  ;;  %1528 = vmatprep.subr.bf16.mxu1 %v4220_v42 }
 0x286   : > { %1488 = vmatpush1.bf16.msra.mxu0 %v4215_v43  ;;  %1529 = vmatpush1.bf16.msra.mxu1 %v4218_v44  ;;  %v4299_v44 = vld [vmem:[#allocation8 + $0xe8] ss:$16 sps:$4 sm:$0xff]  }
 0x287   : > { %1489 = vmatprep.subr.bf16.mxu0 %v4223_v45  ;;  %1530 = vmatprep.subr.bf16.mxu1 %v4226_v46 }
 0x28a   : > { %1490 = vmatpush1.bf16.msra.mxu0 %v4221_v47  ;;  %1531 = vmatpush1.bf16.msra.mxu1 %v4224_v48 }
 0x28b   : > { %1491 = vmatprep.subr.bf16.mxu0 %v4229_v49  ;;  %1532 = vmatprep.subr.bf16.mxu1 %v4232_v50  ;;  %v4302_v49 = vld [vmem:[#allocation8 + $0x2e8] ss:$16 sps:$4 sm:$0xff]  }
 0x28e   : > { %1492 = vmatpush1.bf16.msra.mxu0 %v4227_v51  ;;  %1533 = vmatpush1.bf16.msra.mxu1 %v4230_v52  ;;  %v4307_v51 = vld [vmem:[#allocation8 + $0xcc] ss:$16 sps:$4 sm:$0xff]  }
 0x28f   : > { %1493 = vmatprep.subr.bf16.mxu0 %v4235_v53  ;;  %1534 = vmatprep.subr.bf16.mxu1 %v4238_v54  ;;  %v4310_v54 = vld [vmem:[#allocation8 + $0x2cc] ss:$16 sps:$4 sm:$0xff]  }
 0x292   : > { %1494 = vmatpush1.bf16.msra.mxu0 %v4233_v55  ;;  %1535 = vmatpush1.bf16.msra.mxu1 %v4236_v56  ;;  %v4305_v55 = vld [vmem:[#allocation8 + $0xc8] ss:$16 sps:$4 sm:$0xff]  }
 0x293   : > { %1495 = vmatprep.subr.bf16.mxu0 %v4241_v57  ;;  %1536 = vmatprep.subr.bf16.mxu1 %v4244_v58  ;;  %v4308_v56 = vld [vmem:[#allocation8 + $0x2c8] ss:$16 sps:$4 sm:$0xff]   ;;  %v4313_v57 = vld [vmem:[#allocation8 + $0xac] ss:$16 sps:$4 sm:$0xff]  }
 0x294   : > { %v4316_v58 = vld [vmem:[#allocation8 + $0x2ac] ss:$16 sps:$4 sm:$0xff]  }
 0x296   : > { %1496 = vmatpush1.bf16.msra.mxu0 %v4239_v59  ;;  %1537 = vmatpush1.bf16.msra.mxu1 %v4242_v60  ;;  %v4311_v59 = vld [vmem:[#allocation8 + $0xa8] ss:$16 sps:$4 sm:$0xff]  }
 0x297   : > { %1497 = vmatprep.subr.bf16.mxu0 %v4247_v61  ;;  %1538 = vmatprep.subr.bf16.mxu1 %v4250_v62  ;;  %v4314_v60 = vld [vmem:[#allocation8 + $0x2a8] ss:$16 sps:$4 sm:$0xff]   ;;  %v4319_v61 = vld [vmem:[#allocation8 + $0x8c] ss:$16 sps:$4 sm:$0xff]  }
 0x298   : > { %v4322_v62 = vld [vmem:[#allocation8 + $0x28c] ss:$16 sps:$4 sm:$0xff]  }
 0x29a   : > { %1498 = vmatpush1.bf16.msra.mxu0 %v4245_v63  ;;  %1539 = vmatpush1.bf16.msra.mxu1 %v4248_v0  ;;  %v4317_v63 = vld [vmem:[#allocation8 + $0x88] ss:$16 sps:$4 sm:$0xff]  }
 0x29b   : > { %1499 = vmatprep.subr.bf16.mxu0 %v4253_v1  ;;  %1540 = vmatprep.subr.bf16.mxu1 %v4256_v2  ;;  %v4320_v0 = vld [vmem:[#allocation8 + $0x288] ss:$16 sps:$4 sm:$0xff]   ;;  %v4325_v1 = vld [vmem:[#allocation8 + $0x6c] ss:$16 sps:$4 sm:$0xff]  }
 0x29c   : > { %v4328_v2 = vld [vmem:[#allocation8 + $0x26c] ss:$16 sps:$4 sm:$0xff]  }
 0x29e   : > { %1500 = vmatpush2.bf16.msra.mxu0 %v4251_v3  ;;  %1541 = vmatpush2.bf16.msra.mxu1 %v4254_v4  ;;  %v4323_v3 = vld [vmem:[#allocation8 + $0x68] ss:$16 sps:$4 sm:$0xff]  }
 0x29f   : > { %1501 = vmatprep.subr.bf16.mxu0 %v4259_v6  ;;  %1542 = vmatprep.subr.bf16.mxu1 %v4262_v7  ;;  %v4326_v4 = vld [vmem:[#allocation8 + $0x268] ss:$16 sps:$4 sm:$0xff]   ;;  %v4331_v6 = vld [vmem:[#allocation8 + $0x4c] ss:$16 sps:$4 sm:$0xff]  }
 0x2a0   : > { %v4334_v7 = vld [vmem:[#allocation8 + $0x24c] ss:$16 sps:$4 sm:$0xff]  }
 0x2a2   : > { %1502 = vmatpush2.bf16.msra.mxu0 %v4257_v8  ;;  %1543 = vmatpush2.bf16.msra.mxu1 %v4260_v12  ;;  %v4329_v8 = vld [vmem:[#allocation8 + $0x48] ss:$16 sps:$4 sm:$0xff]  }
 0x2a3   : > { %1503 = vmatprep.subr.bf16.mxu0 %v4265_v13  ;;  %1544 = vmatprep.subr.bf16.mxu1 %v4268_v14  ;;  %v4332_v12 = vld [vmem:[#allocation8 + $0x248] ss:$16 sps:$4 sm:$0xff]   ;;  %v4337_v13 = vld [vmem:[#allocation8 + $0x2c] ss:$16 sps:$4 sm:$0xff]  }
 0x2a4   : > { %v4340_v14 = vld [vmem:[#allocation8 + $0x22c] ss:$16 sps:$4 sm:$0xff]  }
 0x2a6   : > { %1504 = vmatpush2.bf16.msra.mxu0 %v4263_v15  ;;  %1545 = vmatpush2.bf16.msra.mxu1 %v4266_v16  ;;  %v4335_v15 = vld [vmem:[#allocation8 + $0x28] ss:$16 sps:$4 sm:$0xff]  }
 0x2a7   : > { %1505 = vmatprep.subr.bf16.mxu0 %v4271_v17  ;;  %1546 = vmatprep.subr.bf16.mxu1 %v4274_v18  ;;  %v4338_v16 = vld [vmem:[#allocation8 + $0x228] ss:$16 sps:$4 sm:$0xff]   ;;  %v4343_v17 = vld [vmem:[#allocation8 + $0xc] ss:$16 sps:$4 sm:$0xff]  }
 0x2a8   : > { %v4346_v18 = vld [vmem:[#allocation8 + $0x20c] ss:$16 sps:$4 sm:$0xff]  }
 0x2aa   : > { %1506 = vmatpush2.bf16.msra.mxu0 %v4269_v19  ;;  %1547 = vmatpush2.bf16.msra.mxu1 %v4272_v20  ;;  %v4341_v19 = vld [vmem:[#allocation8 + $0x8] ss:$16 sps:$4 sm:$0xff]  }
 0x2ab   : > { %1507 = vmatprep.subr.bf16.mxu0 %v4277_v21  ;;  %1548 = vmatprep.subr.bf16.mxu1 %v4280_v22  ;;  %v4344_v20 = vld [vmem:[#allocation8 + $0x208] ss:$16 sps:$4 sm:$0xff]   ;;  %v4349_v21 = vld [vmem:[#allocation8 + $0x1ec] ss:$16 sps:$4 sm:$0xff]  }
 0x2ac   : > { %v4352_v22 = vld [vmem:[#allocation8 + $0x3ec] ss:$16 sps:$4 sm:$0xff]  }
 0x2ae   : > { %1508 = vmatpush2.bf16.msra.mxu0 %v4275_v23  ;;  %1549 = vmatpush2.bf16.msra.mxu1 %v4278_v24  ;;  %v4347_v23 = vld [vmem:[#allocation8 + $0x1e8] ss:$16 sps:$4 sm:$0xff]  }
 0x2af   : > { %1509 = vmatprep.subr.bf16.mxu0 %v4283_v25  ;;  %1550 = vmatprep.subr.bf16.mxu1 %v4286_v26  ;;  %v4350_v24 = vld [vmem:[#allocation8 + $0x3e8] ss:$16 sps:$4 sm:$0xff]   ;;  %v4355_v25 = vld [vmem:[#allocation8 + $0x1cc] ss:$16 sps:$4 sm:$0xff]  }
 0x2b0   : > { %v4358_v26 = vld [vmem:[#allocation8 + $0x3cc] ss:$16 sps:$4 sm:$0xff]  }
 0x2b2   : > { %1510 = vmatpush2.bf16.msra.mxu0 %v4281_v27  ;;  %1551 = vmatpush2.bf16.msra.mxu1 %v4284_v28  ;;  %v4353_v27 = vld [vmem:[#allocation8 + $0x1c8] ss:$16 sps:$4 sm:$0xff]  }
 0x2b3   : > { %1511 = vmatprep.subr.bf16.mxu0 %v4289_v29  ;;  %1552 = vmatprep.subr.bf16.mxu1 %v4292_v30  ;;  %v4356_v28 = vld [vmem:[#allocation8 + $0x3c8] ss:$16 sps:$4 sm:$0xff]   ;;  %v4361_v29 = vld [vmem:[#allocation8 + $0x1ac] ss:$16 sps:$4 sm:$0xff]  }
 0x2b4   : > { %v4364_v30 = vld [vmem:[#allocation8 + $0x3ac] ss:$16 sps:$4 sm:$0xff]  }
 0x2b6   : > { %1512 = vmatpush2.bf16.msra.mxu0 %v4287_v31  ;;  %1553 = vmatpush2.bf16.msra.mxu1 %v4290_v32  ;;  %v4359_v31 = vld [vmem:[#allocation8 + $0x1a8] ss:$16 sps:$4 sm:$0xff]  }
 0x2b7   : > { %1513 = vmatprep.subr.bf16.mxu0 %v4295_v33  ;;  %1554 = vmatprep.subr.bf16.mxu1 %v4298_v34  ;;  %v4362_v32 = vld [vmem:[#allocation8 + $0x3a8] ss:$16 sps:$4 sm:$0xff]   ;;  %v4367_v33 = vld [vmem:[#allocation8 + $0x18c] ss:$16 sps:$4 sm:$0xff]  }
 0x2b8   : > { %v4370_v34 = vld [vmem:[#allocation8 + $0x38c] ss:$16 sps:$4 sm:$0xff]  }
 0x2ba   : > { %1514 = vmatpush2.bf16.msra.mxu0 %v4293_v35  ;;  %1555 = vmatpush2.bf16.msra.mxu1 %v4296_v36  ;;  %v4365_v35 = vld [vmem:[#allocation8 + $0x188] ss:$16 sps:$4 sm:$0xff]  }
 0x2bb   : > { %1565 = vmatprep.subr.bf16.mxu0 %v4301_v37  ;;  %1606 = vmatprep.subr.bf16.mxu1 %v4304_v38  ;;  %v4368_v36 = vld [vmem:[#allocation8 + $0x388] ss:$16 sps:$4 sm:$0xff]   ;;  %v4373_v37 = vld [vmem:[#allocation8 + $0x16c] ss:$16 sps:$4 sm:$0xff]  }
 0x2bc   : > { %v4376_v38 = vld [vmem:[#allocation8 + $0x36c] ss:$16 sps:$4 sm:$0xff]  }
 0x33d   : > { %v535_v39 = vpop.f32.mrf.mxu0  ;;  %v576_v40 = vpop.f32.mrf.mxu1 }
 0x33e   : > { %3435 = vst [vmem:[%s5344_s8] sm:$0xff] %v535_v39  ;;  %3437 = vst [vmem:[%s5344_s8 + $0x10] sm:$0xff] %v576_v40  ;;  %v5350_v45 = vpack.c.bf16 %v535_v39, %v535_v39  ;;  %v5352_v50 = vpack.c.bf16 %v576_v40, %v576_v40  ;;  %v4371_v39 = vld [vmem:[#allocation8 + $0x168] ss:$16 sps:$4 sm:$0xff]  }
 0x33f   : > { %v537_v41 = vpop.f32.mrf.mxu0  ;;  %v578_v42 = vpop.f32.mrf.mxu1  ;;  %v4374_v40 = vld [vmem:[#allocation8 + $0x368] ss:$16 sps:$4 sm:$0xff]  }
 0x340   : > { %3436 = vst [vmem:[%s5344_s8 + $0x8] sm:$0xff] %v537_v41  ;;  %3438 = vst [vmem:[%s5344_s8 + $0x18] sm:$0xff] %v578_v42  ;;  %v712_v43 = vpack.c.bf16 %v537_v41, %v537_v41  ;;  %v714_v48 = vpack.c.bf16 %v578_v42, %v578_v42  ;;  %v4379_v41 = vld [vmem:[#allocation8 + $0x14c] ss:$16 sps:$4 sm:$0xff]  }
 0x341   : > { %v539_v46 = vpop.f32.mrf.mxu0  ;;  %v580_v47 = vpop.f32.mrf.mxu1  ;;  %v4382_v42 = vld [vmem:[#allocation8 + $0x34c] ss:$16 sps:$4 sm:$0xff]  }
 0x342   : > { %1515 = vmatprep.mubr.bf16.mxu0 %v712_v43  ;;  %1556 = vmatprep.mubr.bf16.mxu1 %v714_v48  ;;  %v4385_v46 = vld [vmem:[#allocation8 + $0x12c] ss:$16 sps:$4 sm:$0xff]  }
 0x343   : > { %v540_v52 = vpop.f32.mrf.mxu0  ;;  %v581_v53 = vpop.f32.mrf.mxu1  ;;  %1516 = vmatmul.mubr.bf16.vlgmr.msra.gmra.mxu0 %v5350_v45  ;;  %1557 = vmatmul.mubr.bf16.vlgmr.msra.gmra.mxu1 %v5352_v50  ;;  %v4388_v47 = vld [vmem:[#allocation8 + $0x32c] ss:$16 sps:$4 sm:$0xff]  }
 0x344   : > { %1566 = vmatpush1.bf16.msra.mxu0 %v4299_v44  ;;  %1607 = vmatpush1.bf16.msra.mxu1 %v4302_v49  ;;  %v4380_v44 = vld [vmem:[#allocation8 + $0x348] ss:$16 sps:$4 sm:$0xff]   ;;  %v4394_v52 = vld [vmem:[#allocation8 + $0x30c] ss:$16 sps:$4 sm:$0xff]  }
 0x345   : > { %1597 = vmatprep.mubr.bf16.mxu0 %v712_v43  ;;  %1638 = vmatprep.mubr.bf16.mxu1 %v714_v48  ;;  %v4377_v43 = vld [vmem:[#allocation8 + $0x148] ss:$16 sps:$4 sm:$0xff]  }
 0x346   : > { %1567 = vmatprep.subr.bf16.mxu0 %v4307_v51  ;;  %1608 = vmatprep.subr.bf16.mxu1 %v4310_v54  ;;  %v4383_v48 = vld [vmem:[#allocation8 + $0x128] ss:$16 sps:$4 sm:$0xff]   ;;  %v4391_v51 = vld [vmem:[#allocation8 + $0x10c] ss:$16 sps:$4 sm:$0xff]  }
 0x347   : > { %v4386_v49 = vld [vmem:[#allocation8 + $0x328] ss:$16 sps:$4 sm:$0xff]  }
 0x348   : > { %1568 = vmatpush1.bf16.msra.mxu0 %v4305_v55  ;;  %1609 = vmatpush1.bf16.msra.mxu1 %v4308_v56  ;;  %v4389_v53 = vld [vmem:[#allocation8 + $0x108] ss:$16 sps:$4 sm:$0xff]   ;;  %v4397_v55 = vld [vmem:[#allocation7 + $0xe4] ss:$16 sps:$4 sm:$0xff]  }
 0x349   : > { %1569 = vmatprep.subr.bf16.mxu0 %v4313_v57  ;;  %1610 = vmatprep.subr.bf16.mxu1 %v4316_v58  ;;  %v4392_v54 = vld [vmem:[#allocation8 + $0x308] ss:$16 sps:$4 sm:$0xff]   ;;  %v4400_v56 = vld [vmem:[#allocation7 + $0x2e4] ss:$16 sps:$4 sm:$0xff]   ;;  %v4395_v57 = vld [vmem:[#allocation7 + $0xe0] ss:$16 sps:$4 sm:$0xff]  }
 0x34a   : > { %v4398_v58 = vld [vmem:[#allocation7 + $0x2e0] ss:$16 sps:$4 sm:$0xff]  }
 0x34c   : > { %1570 = vmatpush1.bf16.msra.mxu0 %v4311_v59  ;;  %1611 = vmatpush1.bf16.msra.mxu1 %v4314_v60  ;;  %v4403_v59 = vld [vmem:[#allocation7 + $0xc4] ss:$16 sps:$4 sm:$0xff]  }
 0x34d   : > { %1571 = vmatprep.subr.bf16.mxu0 %v4319_v61  ;;  %1612 = vmatprep.subr.bf16.mxu1 %v4322_v62  ;;  %v4406_v60 = vld [vmem:[#allocation7 + $0x2c4] ss:$16 sps:$4 sm:$0xff]   ;;  %v4401_v61 = vld [vmem:[#allocation7 + $0xc0] ss:$16 sps:$4 sm:$0xff]  }
 0x34e   : > { %v4404_v62 = vld [vmem:[#allocation7 + $0x2c0] ss:$16 sps:$4 sm:$0xff]  }
 0x350   : > { %1572 = vmatpush1.bf16.msra.mxu0 %v4317_v63  ;;  %1613 = vmatpush1.bf16.msra.mxu1 %v4320_v0  ;;  %v4409_v63 = vld [vmem:[#allocation7 + $0xa4] ss:$16 sps:$4 sm:$0xff]  }
 0x351   : > { %1573 = vmatprep.subr.bf16.mxu0 %v4325_v1  ;;  %1614 = vmatprep.subr.bf16.mxu1 %v4328_v2  ;;  %v4412_v0 = vld [vmem:[#allocation7 + $0x2a4] ss:$16 sps:$4 sm:$0xff]   ;;  %v4407_v1 = vld [vmem:[#allocation7 + $0xa0] ss:$16 sps:$4 sm:$0xff]  }
 0x352   : > { %v4410_v2 = vld [vmem:[#allocation7 + $0x2a0] ss:$16 sps:$4 sm:$0xff]  }
 0x354   : > { %1574 = vmatpush1.bf16.msra.mxu0 %v4323_v3  ;;  %1615 = vmatpush1.bf16.msra.mxu1 %v4326_v4  ;;  %v4413_v3 = vld [vmem:[#allocation7 + $0x80] ss:$16 sps:$4 sm:$0xff]  }
 0x355   : > { %1575 = vmatprep.subr.bf16.mxu0 %v4331_v6  ;;  %1616 = vmatprep.subr.bf16.mxu1 %v4334_v7  ;;  %v4416_v4 = vld [vmem:[#allocation7 + $0x280] ss:$16 sps:$4 sm:$0xff]   ;;  %v4421_v6 = vld [vmem:[#allocation7 + $0x64] ss:$16 sps:$4 sm:$0xff]  }
 0x356   : > { %v4424_v7 = vld [vmem:[#allocation7 + $0x264] ss:$16 sps:$4 sm:$0xff]  }
 0x358   : > { %1576 = vmatpush1.bf16.msra.mxu0 %v4329_v8  ;;  %1617 = vmatpush1.bf16.msra.mxu1 %v4332_v12  ;;  %v4419_v8 = vld [vmem:[#allocation7 + $0x60] ss:$16 sps:$4 sm:$0xff]  }
 0x359   : > { %1577 = vmatprep.subr.bf16.mxu0 %v4337_v13  ;;  %1618 = vmatprep.subr.bf16.mxu1 %v4340_v14  ;;  %v4422_v12 = vld [vmem:[#allocation7 + $0x260] ss:$16 sps:$4 sm:$0xff]   ;;  %v4427_v13 = vld [vmem:[#allocation7 + $0x44] ss:$16 sps:$4 sm:$0xff]  }
 0x35a   : > { %v4430_v14 = vld [vmem:[#allocation7 + $0x244] ss:$16 sps:$4 sm:$0xff]  }
 0x35c   : > { %1578 = vmatpush1.bf16.msra.mxu0 %v4335_v15  ;;  %1619 = vmatpush1.bf16.msra.mxu1 %v4338_v16  ;;  %v4425_v15 = vld [vmem:[#allocation7 + $0x40] ss:$16 sps:$4 sm:$0xff]  }
 0x35d   : > { %1579 = vmatprep.subr.bf16.mxu0 %v4343_v17  ;;  %1620 = vmatprep.subr.bf16.mxu1 %v4346_v18  ;;  %v4428_v16 = vld [vmem:[#allocation7 + $0x240] ss:$16 sps:$4 sm:$0xff]   ;;  %v4433_v17 = vld [vmem:[#allocation7 + $0x24] ss:$16 sps:$4 sm:$0xff]  }
 0x35e   : > { %v4436_v18 = vld [vmem:[#allocation7 + $0x224] ss:$16 sps:$4 sm:$0xff]  }
 0x360   : > { %1580 = vmatpush1.bf16.msra.mxu0 %v4341_v19  ;;  %1621 = vmatpush1.bf16.msra.mxu1 %v4344_v20  ;;  %v4431_v19 = vld [vmem:[#allocation7 + $0x20] ss:$16 sps:$4 sm:$0xff]  }
 0x361   : > { %1581 = vmatprep.subr.bf16.mxu0 %v4349_v21  ;;  %1622 = vmatprep.subr.bf16.mxu1 %v4352_v22  ;;  %v4434_v20 = vld [vmem:[#allocation7 + $0x220] ss:$16 sps:$4 sm:$0xff]   ;;  %v4439_v21 = vld [vmem:[#allocation7 + $0x4] ss:$16 sps:$4 sm:$0xff]  }
 0x362   : > { %v4442_v22 = vld [vmem:[#allocation7 + $0x204] ss:$16 sps:$4 sm:$0xff]  }
 0x364   : > { %1582 = vmatpush2.bf16.msra.mxu0 %v4347_v23  ;;  %1623 = vmatpush2.bf16.msra.mxu1 %v4350_v24  ;;  %v4437_v23 = vld [vmem:[#allocation7] ss:$16 sps:$4 sm:$0xff]  }
 0x365   : > { %1583 = vmatprep.subr.bf16.mxu0 %v4355_v25  ;;  %1624 = vmatprep.subr.bf16.mxu1 %v4358_v26  ;;  %v4440_v24 = vld [vmem:[#allocation7 + $0x200] ss:$16 sps:$4 sm:$0xff]   ;;  %v4445_v25 = vld [vmem:[#allocation7 + $0x1e4] ss:$16 sps:$4 sm:$0xff]  }
 0x366   : > { %v4448_v26 = vld [vmem:[#allocation7 + $0x3e4] ss:$16 sps:$4 sm:$0xff]  }
 0x368   : > { %1584 = vmatpush2.bf16.msra.mxu0 %v4353_v27  ;;  %1625 = vmatpush2.bf16.msra.mxu1 %v4356_v28  ;;  %v4443_v27 = vld [vmem:[#allocation7 + $0x1e0] ss:$16 sps:$4 sm:$0xff]  }
 0x369   : > { %1585 = vmatprep.subr.bf16.mxu0 %v4361_v29  ;;  %1626 = vmatprep.subr.bf16.mxu1 %v4364_v30  ;;  %v4446_v28 = vld [vmem:[#allocation7 + $0x3e0] ss:$16 sps:$4 sm:$0xff]   ;;  %v4451_v29 = vld [vmem:[#allocation7 + $0x1c4] ss:$16 sps:$4 sm:$0xff]  }
 0x36a   : > { %v4454_v30 = vld [vmem:[#allocation7 + $0x3c4] ss:$16 sps:$4 sm:$0xff]  }
 0x36c   : > { %1586 = vmatpush2.bf16.msra.mxu0 %v4359_v31  ;;  %1627 = vmatpush2.bf16.msra.mxu1 %v4362_v32  ;;  %v4449_v31 = vld [vmem:[#allocation7 + $0x1c0] ss:$16 sps:$4 sm:$0xff]  }
 0x36d   : > { %1587 = vmatprep.subr.bf16.mxu0 %v4367_v33  ;;  %1628 = vmatprep.subr.bf16.mxu1 %v4370_v34  ;;  %v4452_v32 = vld [vmem:[#allocation7 + $0x3c0] ss:$16 sps:$4 sm:$0xff]   ;;  %v4457_v33 = vld [vmem:[#allocation7 + $0x1a4] ss:$16 sps:$4 sm:$0xff]  }
 0x36e   : > { %v4460_v34 = vld [vmem:[#allocation7 + $0x3a4] ss:$16 sps:$4 sm:$0xff]  }
 0x370   : > { %1588 = vmatpush2.bf16.msra.mxu0 %v4365_v35  ;;  %1629 = vmatpush2.bf16.msra.mxu1 %v4368_v36  ;;  %v4455_v35 = vld [vmem:[#allocation7 + $0x1a0] ss:$16 sps:$4 sm:$0xff]  }
 0x371   : > { %1589 = vmatprep.subr.bf16.mxu0 %v4373_v37  ;;  %1630 = vmatprep.subr.bf16.mxu1 %v4376_v38  ;;  %v4458_v36 = vld [vmem:[#allocation7 + $0x3a0] ss:$16 sps:$4 sm:$0xff]   ;;  %v4463_v37 = vld [vmem:[#allocation7 + $0x184] ss:$16 sps:$4 sm:$0xff]  }
 0x372   : > { %v4466_v38 = vld [vmem:[#allocation7 + $0x384] ss:$16 sps:$4 sm:$0xff]  }
 0x374   : > { %1590 = vmatpush2.bf16.msra.mxu0 %v4371_v39  ;;  %1631 = vmatpush2.bf16.msra.mxu1 %v4374_v40  ;;  %v4461_v39 = vld [vmem:[#allocation7 + $0x180] ss:$16 sps:$4 sm:$0xff]  }
 0x375   : > { %1591 = vmatprep.subr.bf16.mxu0 %v4379_v41  ;;  %1632 = vmatprep.subr.bf16.mxu1 %v4382_v42  ;;  %v4464_v40 = vld [vmem:[#allocation7 + $0x380] ss:$16 sps:$4 sm:$0xff]   ;;  %v4469_v41 = vld [vmem:[#allocation7 + $0x164] ss:$16 sps:$4 sm:$0xff]  }
 0x376   : > { %v4472_v42 = vld [vmem:[#allocation7 + $0x364] ss:$16 sps:$4 sm:$0xff]  }
 0x378   : > { %1592 = vmatpush2.bf16.msra.mxu0 %v4377_v43  ;;  %1633 = vmatpush2.bf16.msra.mxu1 %v4380_v44  ;;  %v4467_v43 = vld [vmem:[#allocation7 + $0x160] ss:$16 sps:$4 sm:$0xff]  }
 0x379   : > { %1593 = vmatprep.subr.bf16.mxu0 %v4385_v46  ;;  %1634 = vmatprep.subr.bf16.mxu1 %v4388_v47  ;;  %v4470_v44 = vld [vmem:[#allocation7 + $0x360] ss:$16 sps:$4 sm:$0xff]   ;;  %v4475_v46 = vld [vmem:[#allocation7 + $0x144] ss:$16 sps:$4 sm:$0xff]  }
 0x37a   : > { %v4478_v47 = vld [vmem:[#allocation7 + $0x344] ss:$16 sps:$4 sm:$0xff]  }
 0x37c   : > { %1594 = vmatpush2.bf16.msra.mxu0 %v4383_v48  ;;  %1635 = vmatpush2.bf16.msra.mxu1 %v4386_v49  ;;  %v4473_v48 = vld [vmem:[#allocation7 + $0x140] ss:$16 sps:$4 sm:$0xff]  }
 0x37d   : > { %1595 = vmatprep.subr.bf16.mxu0 %v4391_v51  ;;  %1636 = vmatprep.subr.bf16.mxu1 %v4394_v52  ;;  %v4476_v49 = vld [vmem:[#allocation7 + $0x340] ss:$16 sps:$4 sm:$0xff]   ;;  %v4481_v51 = vld [vmem:[#allocation7 + $0x124] ss:$16 sps:$4 sm:$0xff]  }
 0x37e   : > { %v4484_v52 = vld [vmem:[#allocation7 + $0x324] ss:$16 sps:$4 sm:$0xff]  }
 0x380   : > { %1596 = vmatpush2.bf16.msra.mxu0 %v4389_v53  ;;  %1637 = vmatpush2.bf16.msra.mxu1 %v4392_v54  ;;  %v4479_v53 = vld [vmem:[#allocation7 + $0x120] ss:$16 sps:$4 sm:$0xff]  }
 0x381   : > { %2287 = vmatprep.subr.bf16.mxu0 %v4397_v55  ;;  %2328 = vmatprep.subr.bf16.mxu1 %v4400_v56  ;;  %v4482_v54 = vld [vmem:[#allocation7 + $0x320] ss:$16 sps:$4 sm:$0xff]   ;;  %v4487_v55 = vld [vmem:[#allocation7 + $0x104] ss:$16 sps:$4 sm:$0xff]  }
 0x382   : > { %v4490_v56 = vld [vmem:[#allocation7 + $0x304] ss:$16 sps:$4 sm:$0xff]  }
 0x383   : > { %1598 = vmatmul.mubr.bf16.vlgmr.msra.gmra.mxu0 %v5350_v45  ;;  %1639 = vmatmul.mubr.bf16.vlgmr.msra.gmra.mxu1 %v5352_v50  ;;  %v4415_v45 = vld [vmem:[#allocation7 + $0x84] ss:$16 sps:$4 sm:$0xff]  }
 0x384   : > { %2288 = vmatpush1.bf16.msra.mxu0 %v4395_v57  ;;  %2329 = vmatpush1.bf16.msra.mxu1 %v4398_v58  ;;  %v4418_v50 = vld [vmem:[#allocation7 + $0x284] ss:$16 sps:$4 sm:$0xff]   ;;  %v4485_v57 = vld [vmem:[#allocation7 + $0x100] ss:$16 sps:$4 sm:$0xff]  }
 0x385   : > { %2289 = vmatprep.subr.bf16.mxu0 %v4403_v59  ;;  %2330 = vmatprep.subr.bf16.mxu1 %v4406_v60  ;;  %v4488_v58 = vld [vmem:[#allocation7 + $0x300] ss:$16 sps:$4 sm:$0xff]   ;;  %v4493_v59 = vld [vmem:[#allocation7 + $0xec] ss:$16 sps:$4 sm:$0xff]  }
 0x386   : > { %2319 = vmatprep.mubr.bf16.mxu0 %v5324_v5  ;;  %2360 = vmatprep.mubr.bf16.mxu1 %v5329_v9  ;;  %v4496_v60 = vld [vmem:[#allocation7 + $0x2ec] ss:$16 sps:$4 sm:$0xff]  }
 0x388   : > { %2290 = vmatpush1.bf16.msra.mxu0 %v4401_v61  ;;  %2331 = vmatpush1.bf16.msra.mxu1 %v4404_v62  ;;  %v4491_v61 = vld [vmem:[#allocation7 + $0xe8] ss:$16 sps:$4 sm:$0xff]  }
 0x389   : > { %2291 = vmatprep.subr.bf16.mxu0 %v4409_v63  ;;  %2332 = vmatprep.subr.bf16.mxu1 %v4412_v0  ;;  %v4494_v62 = vld [vmem:[#allocation7 + $0x2e8] ss:$16 sps:$4 sm:$0xff]   ;;  %v4499_v63 = vld [vmem:[#allocation7 + $0xcc] ss:$16 sps:$4 sm:$0xff]  }
 0x38a   : > { %v4502_v0 = vld [vmem:[#allocation7 + $0x2cc] ss:$16 sps:$4 sm:$0xff]  }
 0x38c   : > { %2292 = vmatpush1.bf16.msra.mxu0 %v4407_v1  ;;  %2333 = vmatpush1.bf16.msra.mxu1 %v4410_v2  ;;  %v4497_v1 = vld [vmem:[#allocation7 + $0xc8] ss:$16 sps:$4 sm:$0xff]  }
 0x38d   : > { %2293 = vmatprep.subr.bf16.mxu0 %v4415_v45  ;;  %2334 = vmatprep.subr.bf16.mxu1 %v4418_v50  ;;  %v4500_v2 = vld [vmem:[#allocation7 + $0x2c8] ss:$16 sps:$4 sm:$0xff]   ;;  %v4505_v45 = vld [vmem:[#allocation7 + $0xac] ss:$16 sps:$4 sm:$0xff]  }
 0x38e   : > { %v4508_v50 = vld [vmem:[#allocation7 + $0x2ac] ss:$16 sps:$4 sm:$0xff]  }
 0x390   : > { %2294 = vmatpush1.bf16.msra.mxu0 %v4413_v3  ;;  %2335 = vmatpush1.bf16.msra.mxu1 %v4416_v4  ;;  %v4503_v3 = vld [vmem:[#allocation7 + $0xa8] ss:$16 sps:$4 sm:$0xff]  }
 0x391   : > { %2295 = vmatprep.subr.bf16.mxu0 %v4421_v6  ;;  %2336 = vmatprep.subr.bf16.mxu1 %v4424_v7  ;;  %v4506_v4 = vld [vmem:[#allocation7 + $0x2a8] ss:$16 sps:$4 sm:$0xff]   ;;  %v4511_v6 = vld [vmem:[#allocation7 + $0x8c] ss:$16 sps:$4 sm:$0xff]  }
 0x392   : > { %v4514_v7 = vld [vmem:[#allocation7 + $0x28c] ss:$16 sps:$4 sm:$0xff]  }
 0x394   : > { %2296 = vmatpush1.bf16.msra.mxu0 %v4419_v8  ;;  %2337 = vmatpush1.bf16.msra.mxu1 %v4422_v12  ;;  %v4509_v8 = vld [vmem:[#allocation7 + $0x88] ss:$16 sps:$4 sm:$0xff]  }
 0x395   : > { %2297 = vmatprep.subr.bf16.mxu0 %v4427_v13  ;;  %2338 = vmatprep.subr.bf16.mxu1 %v4430_v14  ;;  %v4512_v12 = vld [vmem:[#allocation7 + $0x288] ss:$16 sps:$4 sm:$0xff]   ;;  %v4517_v13 = vld [vmem:[#allocation7 + $0x6c] ss:$16 sps:$4 sm:$0xff]  }
 0x396   : > { %v4520_v14 = vld [vmem:[#allocation7 + $0x26c] ss:$16 sps:$4 sm:$0xff]  }
 0x398   : > { %2298 = vmatpush1.bf16.msra.mxu0 %v4425_v15  ;;  %2339 = vmatpush1.bf16.msra.mxu1 %v4428_v16  ;;  %v4523_v15 = vld [vmem:[#allocation7 + $0x4c] ss:$16 sps:$4 sm:$0xff]  }
 0x399   : > { %2299 = vmatprep.subr.bf16.mxu0 %v4433_v17  ;;  %2340 = vmatprep.subr.bf16.mxu1 %v4436_v18  ;;  %v4526_v16 = vld [vmem:[#allocation7 + $0x24c] ss:$16 sps:$4 sm:$0xff]   ;;  %v4521_v17 = vld [vmem:[#allocation7 + $0x48] ss:$16 sps:$4 sm:$0xff]  }
 0x39a   : > { %v4524_v18 = vld [vmem:[#allocation7 + $0x248] ss:$16 sps:$4 sm:$0xff]  }
 0x39c   : > { %2300 = vmatpush1.bf16.msra.mxu0 %v4431_v19  ;;  %2341 = vmatpush1.bf16.msra.mxu1 %v4434_v20  ;;  %v4529_v19 = vld [vmem:[#allocation7 + $0x2c] ss:$16 sps:$4 sm:$0xff]  }
 0x39d   : > { %2301 = vmatprep.subr.bf16.mxu0 %v4439_v21  ;;  %2342 = vmatprep.subr.bf16.mxu1 %v4442_v22  ;;  %v4532_v20 = vld [vmem:[#allocation7 + $0x22c] ss:$16 sps:$4 sm:$0xff]   ;;  %v4527_v21 = vld [vmem:[#allocation7 + $0x28] ss:$16 sps:$4 sm:$0xff]  }
 0x39e   : > { %v4530_v22 = vld [vmem:[#allocation7 + $0x228] ss:$16 sps:$4 sm:$0xff]  }
 0x3a0   : > { %2302 = vmatpush1.bf16.msra.mxu0 %v4437_v23  ;;  %2343 = vmatpush1.bf16.msra.mxu1 %v4440_v24  ;;  %v4535_v23 = vld [vmem:[#allocation7 + $0xc] ss:$16 sps:$4 sm:$0xff]  }
 0x3a1   : > { %2303 = vmatprep.subr.bf16.mxu0 %v4445_v25  ;;  %2344 = vmatprep.subr.bf16.mxu1 %v4448_v26  ;;  %v4538_v24 = vld [vmem:[#allocation7 + $0x20c] ss:$16 sps:$4 sm:$0xff]   ;;  %v4533_v25 = vld [vmem:[#allocation7 + $0x8] ss:$16 sps:$4 sm:$0xff]  }
 0x3a2   : > { %v4536_v26 = vld [vmem:[#allocation7 + $0x208] ss:$16 sps:$4 sm:$0xff]  }
 0x3a4   : > { %2304 = vmatpush2.bf16.msra.mxu0 %v4443_v27  ;;  %2345 = vmatpush2.bf16.msra.mxu1 %v4446_v28  ;;  %v4541_v27 = vld [vmem:[#allocation7 + $0x1ec] ss:$16 sps:$4 sm:$0xff]  }
 0x3a5   : > { %2305 = vmatprep.subr.bf16.mxu0 %v4451_v29  ;;  %2346 = vmatprep.subr.bf16.mxu1 %v4454_v30  ;;  %v4544_v28 = vld [vmem:[#allocation7 + $0x3ec] ss:$16 sps:$4 sm:$0xff]   ;;  %v4539_v29 = vld [vmem:[#allocation7 + $0x1e8] ss:$16 sps:$4 sm:$0xff]  }
 0x3a6   : > { %v4542_v30 = vld [vmem:[#allocation7 + $0x3e8] ss:$16 sps:$4 sm:$0xff]  }
 0x3a8   : > { %2306 = vmatpush2.bf16.msra.mxu0 %v4449_v31  ;;  %2347 = vmatpush2.bf16.msra.mxu1 %v4452_v32  ;;  %v4547_v31 = vld [vmem:[#allocation7 + $0x1cc] ss:$16 sps:$4 sm:$0xff]  }
 0x3a9   : > { %2307 = vmatprep.subr.bf16.mxu0 %v4457_v33  ;;  %2348 = vmatprep.subr.bf16.mxu1 %v4460_v34  ;;  %v4550_v32 = vld [vmem:[#allocation7 + $0x3cc] ss:$16 sps:$4 sm:$0xff]   ;;  %v4545_v33 = vld [vmem:[#allocation7 + $0x1c8] ss:$16 sps:$4 sm:$0xff]  }
 0x3aa   : > { %v4548_v34 = vld [vmem:[#allocation7 + $0x3c8] ss:$16 sps:$4 sm:$0xff]  }
 0x3ac   : > { %2308 = vmatpush2.bf16.msra.mxu0 %v4455_v35  ;;  %2349 = vmatpush2.bf16.msra.mxu1 %v4458_v36  ;;  %v4553_v35 = vld [vmem:[#allocation7 + $0x1ac] ss:$16 sps:$4 sm:$0xff]  }
 0x3ad   : > { %2309 = vmatprep.subr.bf16.mxu0 %v4463_v37  ;;  %2350 = vmatprep.subr.bf16.mxu1 %v4466_v38  ;;  %v4556_v36 = vld [vmem:[#allocation7 + $0x3ac] ss:$16 sps:$4 sm:$0xff]   ;;  %v4551_v37 = vld [vmem:[#allocation7 + $0x1a8] ss:$16 sps:$4 sm:$0xff]  }
 0x3ae   : > { %v4554_v38 = vld [vmem:[#allocation7 + $0x3a8] ss:$16 sps:$4 sm:$0xff]  }
 0x3b0   : > { %2310 = vmatpush2.bf16.msra.mxu0 %v4461_v39  ;;  %2351 = vmatpush2.bf16.msra.mxu1 %v4464_v40  ;;  %v4559_v39 = vld [vmem:[#allocation7 + $0x18c] ss:$16 sps:$4 sm:$0xff]  }
 0x3b1   : > { %2311 = vmatprep.subr.bf16.mxu0 %v4469_v41  ;;  %2352 = vmatprep.subr.bf16.mxu1 %v4472_v42  ;;  %v4562_v40 = vld [vmem:[#allocation7 + $0x38c] ss:$16 sps:$4 sm:$0xff]   ;;  %v4557_v41 = vld [vmem:[#allocation7 + $0x188] ss:$16 sps:$4 sm:$0xff]  }
 0x3b2   : > { %v4560_v42 = vld [vmem:[#allocation7 + $0x388] ss:$16 sps:$4 sm:$0xff]  }
 0x3b4   : > { %2312 = vmatpush2.bf16.msra.mxu0 %v4467_v43  ;;  %2353 = vmatpush2.bf16.msra.mxu1 %v4470_v44  ;;  %v4565_v43 = vld [vmem:[#allocation7 + $0x16c] ss:$16 sps:$4 sm:$0xff]  }
 0x3b5   : > { %2313 = vmatprep.subr.bf16.mxu0 %v4475_v46  ;;  %2354 = vmatprep.subr.bf16.mxu1 %v4478_v47  ;;  %v4568_v44 = vld [vmem:[#allocation7 + $0x36c] ss:$16 sps:$4 sm:$0xff]   ;;  %v4563_v46 = vld [vmem:[#allocation7 + $0x168] ss:$16 sps:$4 sm:$0xff]  }
 0x3b6   : > { %v4566_v47 = vld [vmem:[#allocation7 + $0x368] ss:$16 sps:$4 sm:$0xff]  }
 0x3b8   : > { %2314 = vmatpush2.bf16.msra.mxu0 %v4473_v48  ;;  %2355 = vmatpush2.bf16.msra.mxu1 %v4476_v49  ;;  %v4571_v48 = vld [vmem:[#allocation7 + $0x14c] ss:$16 sps:$4 sm:$0xff]  }
 0x3b9   : > { %2315 = vmatprep.subr.bf16.mxu0 %v4481_v51  ;;  %2356 = vmatprep.subr.bf16.mxu1 %v4484_v52  ;;  %v4574_v49 = vld [vmem:[#allocation7 + $0x34c] ss:$16 sps:$4 sm:$0xff]   ;;  %v4569_v51 = vld [vmem:[#allocation7 + $0x148] ss:$16 sps:$4 sm:$0xff]  }
 0x3ba   : > { %v4572_v52 = vld [vmem:[#allocation7 + $0x348] ss:$16 sps:$4 sm:$0xff]  }
 0x3bc   : > { %2316 = vmatpush2.bf16.msra.mxu0 %v4479_v53  ;;  %2357 = vmatpush2.bf16.msra.mxu1 %v4482_v54  ;;  %v4577_v53 = vld [vmem:[#allocation7 + $0x12c] ss:$16 sps:$4 sm:$0xff]  }
 0x3bd   : > { %2317 = vmatprep.subr.bf16.mxu0 %v4487_v55  ;;  %2358 = vmatprep.subr.bf16.mxu1 %v4490_v56  ;;  %v4580_v54 = vld [vmem:[#allocation7 + $0x32c] ss:$16 sps:$4 sm:$0xff]   ;;  %v4575_v55 = vld [vmem:[#allocation7 + $0x128] ss:$16 sps:$4 sm:$0xff]  }
 0x3be   : > { %v4578_v56 = vld [vmem:[#allocation7 + $0x328] ss:$16 sps:$4 sm:$0xff]  }
 0x3c0   : > { %2318 = vmatpush2.bf16.msra.mxu0 %v4485_v57  ;;  %2359 = vmatpush2.bf16.msra.mxu1 %v4488_v58  ;;  %v4583_v57 = vld [vmem:[#allocation7 + $0x10c] ss:$16 sps:$4 sm:$0xff]  }
 0x3c1   : > { %2369 = vmatprep.subr.bf16.mxu0 %v4493_v59  ;;  %2410 = vmatprep.subr.bf16.mxu1 %v4496_v60  ;;  %v4586_v58 = vld [vmem:[#allocation7 + $0x30c] ss:$16 sps:$4 sm:$0xff]   ;;  %v4581_v59 = vld [vmem:[#allocation7 + $0x108] ss:$16 sps:$4 sm:$0xff]  }
 0x3c2   : > { %v4584_v60 = vld [vmem:[#allocation7 + $0x308] ss:$16 sps:$4 sm:$0xff]  }
 0x3c3   : > { %2320 = vmatmul.mubr.bf16.vlgmr.msra.gmra.mxu0 %v5333_v10  ;;  %2361 = vmatmul.mubr.bf16.vlgmr.msra.gmra.mxu1 %v5335_v11 }
 0x3c4   : > { %2370 = vmatpush1.bf16.msra.mxu0 %v4491_v61  ;;  %2411 = vmatpush1.bf16.msra.mxu1 %v4494_v62  ;;  %v4589_v61 = vld [vmem:[#allocation10 + $0xe4] ss:$16 sps:$4 sm:$0xff]   ;;  %v4587_v62 = vld [vmem:[#allocation10 + $0xe0] ss:$16 sps:$4 sm:$0xff]  }
 0x3c5   : > { %2371 = vmatprep.subr.bf16.mxu0 %v4499_v63  ;;  %2412 = vmatprep.subr.bf16.mxu1 %v4502_v0  ;;  %v4592_v63 = vld [vmem:[#allocation10 + $0xc4] ss:$16 sps:$4 sm:$0xff]  }
 0x3c6   : > { %2401 = vmatprep.mubr.bf16.mxu0 %v5324_v5  ;;  %2442 = vmatprep.mubr.bf16.mxu1 %v5329_v9  ;;  %v4515_v5 = vld [vmem:[#allocation7 + $0x68] ss:$16 sps:$4 sm:$0xff]  }
 0x3c7   : > { %v4518_v9 = vld [vmem:[#allocation7 + $0x268] ss:$16 sps:$4 sm:$0xff]  }
 0x3c8   : > { %2372 = vmatpush1.bf16.msra.mxu0 %v4497_v1  ;;  %2413 = vmatpush1.bf16.msra.mxu1 %v4500_v2  ;;  %v4590_v2 = vld [vmem:[#allocation10 + $0xc0] ss:$16 sps:$4 sm:$0xff]  }
 0x3c9   : > { %2373 = vmatprep.subr.bf16.mxu0 %v4505_v45  ;;  %2414 = vmatprep.subr.bf16.mxu1 %v4508_v50 }
 0x3cc   : > { %2374 = vmatpush1.bf16.msra.mxu0 %v4503_v3  ;;  %2415 = vmatpush1.bf16.msra.mxu1 %v4506_v4  ;;  %v4595_v3 = vld [vmem:[#allocation10 + $0xa4] ss:$16 sps:$4 sm:$0xff]  }
 0x3cd   : > { %2375 = vmatprep.subr.bf16.mxu0 %v4511_v6  ;;  %2416 = vmatprep.subr.bf16.mxu1 %v4514_v7 }
 0x3d0   : > { %2376 = vmatpush1.bf16.msra.mxu0 %v4509_v8  ;;  %2417 = vmatpush1.bf16.msra.mxu1 %v4512_v12  ;;  %v4593_v12 = vld [vmem:[#allocation10 + $0xa0] ss:$16 sps:$4 sm:$0xff]  }
 0x3d1   : > { %2377 = vmatprep.subr.bf16.mxu0 %v4517_v13  ;;  %2418 = vmatprep.subr.bf16.mxu1 %v4520_v14 }
 0x3d4   : > { %2378 = vmatpush1.bf16.msra.mxu0 %v4515_v5  ;;  %2419 = vmatpush1.bf16.msra.mxu1 %v4518_v9  ;;  %v4601_v5 = vld [vmem:[#allocation10 + $0x64] ss:$16 sps:$4 sm:$0xff]   ;;  %v4599_v9 = vld [vmem:[#allocation10 + $0x60] ss:$16 sps:$4 sm:$0xff]  }
 0x3d5   : > { %2379 = vmatprep.subr.bf16.mxu0 %v4523_v15  ;;  %2420 = vmatprep.subr.bf16.mxu1 %v4526_v16  ;;  %v4604_v15 = vld [vmem:[#allocation10 + $0x44] ss:$16 sps:$4 sm:$0xff]   ;;  %v4602_v16 = vld [vmem:[#allocation10 + $0x40] ss:$16 sps:$4 sm:$0xff]  }
 0x3d8   : > { %2380 = vmatpush1.bf16.msra.mxu0 %v4521_v17  ;;  %2421 = vmatpush1.bf16.msra.mxu1 %v4524_v18  ;;  %v4607_v17 = vld [vmem:[#allocation10 + $0x24] ss:$16 sps:$4 sm:$0xff]   ;;  %v4605_v18 = vld [vmem:[#allocation10 + $0x20] ss:$16 sps:$4 sm:$0xff]  }
 0x3d9   : > { %2381 = vmatprep.subr.bf16.mxu0 %v4529_v19  ;;  %2422 = vmatprep.subr.bf16.mxu1 %v4532_v20  ;;  %v4610_v19 = vld [vmem:[#allocation10 + $0x4] ss:$16 sps:$4 sm:$0xff]   ;;  %v4608_v20 = vld [vmem:[#allocation10] ss:$16 sps:$4 sm:$0xff]  }
 0x3dc   : > { %2382 = vmatpush1.bf16.msra.mxu0 %v4527_v21  ;;  %2423 = vmatpush1.bf16.msra.mxu1 %v4530_v22  ;;  %v4613_v21 = vld [vmem:[#allocation10 + $0x1e4] ss:$16 sps:$4 sm:$0xff]   ;;  %v4611_v22 = vld [vmem:[#allocation10 + $0x1e0] ss:$16 sps:$4 sm:$0xff]  }
 0x3dd   : > { %2383 = vmatprep.subr.bf16.mxu0 %v4535_v23  ;;  %2424 = vmatprep.subr.bf16.mxu1 %v4538_v24  ;;  %v4616_v23 = vld [vmem:[#allocation10 + $0x1c4] ss:$16 sps:$4 sm:$0xff]   ;;  %v4614_v24 = vld [vmem:[#allocation10 + $0x1c0] ss:$16 sps:$4 sm:$0xff]  }
 0x3e0   : > { %2384 = vmatpush1.bf16.msra.mxu0 %v4533_v25  ;;  %2425 = vmatpush1.bf16.msra.mxu1 %v4536_v26  ;;  %v4619_v25 = vld [vmem:[#allocation10 + $0x1a4] ss:$16 sps:$4 sm:$0xff]   ;;  %v4617_v26 = vld [vmem:[#allocation10 + $0x1a0] ss:$16 sps:$4 sm:$0xff]  }
 0x3e1   : > { %2385 = vmatprep.subr.bf16.mxu0 %v4541_v27  ;;  %2426 = vmatprep.subr.bf16.mxu1 %v4544_v28  ;;  %v4622_v27 = vld [vmem:[#allocation10 + $0x184] ss:$16 sps:$4 sm:$0xff]   ;;  %v4620_v28 = vld [vmem:[#allocation10 + $0x180] ss:$16 sps:$4 sm:$0xff]  }
 0x3e4   : > { %2386 = vmatpush2.bf16.msra.mxu0 %v4539_v29  ;;  %2427 = vmatpush2.bf16.msra.mxu1 %v4542_v30  ;;  %v4625_v29 = vld [vmem:[#allocation10 + $0x164] ss:$16 sps:$4 sm:$0xff]  }
 0x3e5   : > { %2387 = vmatprep.subr.bf16.mxu0 %v4547_v31  ;;  %2428 = vmatprep.subr.bf16.mxu1 %v4550_v32  ;;  %v4637_v30 = vld [vmem:[#allocation10 + $0x2e4] ss:$16 sps:$4 sm:$0xff]   ;;  %v4623_v31 = vld [vmem:[#allocation10 + $0x160] ss:$16 sps:$4 sm:$0xff]  }
 0x3e6   : > { %v4635_v32 = vld [vmem:[#allocation10 + $0x2e0] ss:$16 sps:$4 sm:$0xff]  }
 0x3e8   : > { %2388 = vmatpush2.bf16.msra.mxu0 %v4545_v33  ;;  %2429 = vmatpush2.bf16.msra.mxu1 %v4548_v34  ;;  %v4628_v33 = vld [vmem:[#allocation10 + $0x144] ss:$16 sps:$4 sm:$0xff]   ;;  %v4641_v34 = vld [vmem:[#allocation10 + $0x2c0] ss:$16 sps:$4 sm:$0xff]  }
 0x3e9   : > { %2389 = vmatprep.subr.bf16.mxu0 %v4553_v35  ;;  %2430 = vmatprep.subr.bf16.mxu1 %v4556_v36  ;;  %v4643_v35 = vld [vmem:[#allocation10 + $0x2c4] ss:$16 sps:$4 sm:$0xff]   ;;  %v4626_v36 = vld [vmem:[#allocation10 + $0x140] ss:$16 sps:$4 sm:$0xff]  }
 0x3ec   : > { %2390 = vmatpush2.bf16.msra.mxu0 %v4551_v37  ;;  %2431 = vmatpush2.bf16.msra.mxu1 %v4554_v38  ;;  %v4631_v37 = vld [vmem:[#allocation10 + $0x124] ss:$16 sps:$4 sm:$0xff]   ;;  %v4647_v38 = vld [vmem:[#allocation10 + $0x2a0] ss:$16 sps:$4 sm:$0xff]  }
 0x3ed   : > { %2391 = vmatprep.subr.bf16.mxu0 %v4559_v39  ;;  %2432 = vmatprep.subr.bf16.mxu1 %v4562_v40  ;;  %v4649_v39 = vld [vmem:[#allocation10 + $0x2a4] ss:$16 sps:$4 sm:$0xff]   ;;  %v4629_v40 = vld [vmem:[#allocation10 + $0x120] ss:$16 sps:$4 sm:$0xff]  }
 0x3f0   : > { %2392 = vmatpush2.bf16.msra.mxu0 %v4557_v41  ;;  %2433 = vmatpush2.bf16.msra.mxu1 %v4560_v42  ;;  %v4634_v41 = vld [vmem:[#allocation10 + $0x104] ss:$16 sps:$4 sm:$0xff]   ;;  %v4653_v42 = vld [vmem:[#allocation10 + $0x280] ss:$16 sps:$4 sm:$0xff]  }
 0x3f1   : > { %2393 = vmatprep.subr.bf16.mxu0 %v4565_v43  ;;  %2434 = vmatprep.subr.bf16.mxu1 %v4568_v44  ;;  %v4655_v43 = vld [vmem:[#allocation10 + $0x284] ss:$16 sps:$4 sm:$0xff]   ;;  %v4632_v44 = vld [vmem:[#allocation10 + $0x100] ss:$16 sps:$4 sm:$0xff]  }
 0x3f4   : > { %2394 = vmatpush2.bf16.msra.mxu0 %v4563_v46  ;;  %2435 = vmatpush2.bf16.msra.mxu1 %v4566_v47  ;;  %v4640_v46 = vld [vmem:[#allocation10 + $0xec] ss:$16 sps:$4 sm:$0xff]   ;;  %v4659_v47 = vld [vmem:[#allocation10 + $0x260] ss:$16 sps:$4 sm:$0xff]  }
 0x3f5   : > { %2395 = vmatprep.subr.bf16.mxu0 %v4571_v48  ;;  %2436 = vmatprep.subr.bf16.mxu1 %v4574_v49  ;;  %v4661_v48 = vld [vmem:[#allocation10 + $0x264] ss:$16 sps:$4 sm:$0xff]  }
 0x3f8   : > { %2396 = vmatpush2.bf16.msra.mxu0 %v4569_v51  ;;  %2437 = vmatpush2.bf16.msra.mxu1 %v4572_v52  ;;  %v4667_v51 = vld [vmem:[#allocation10 + $0x244] ss:$16 sps:$4 sm:$0xff]  }
 0x3f9   : > { %2397 = vmatprep.subr.bf16.mxu0 %v4577_v53  ;;  %2438 = vmatprep.subr.bf16.mxu1 %v4580_v54  ;;  %v4665_v53 = vld [vmem:[#allocation10 + $0x240] ss:$16 sps:$4 sm:$0xff]  }
 0x3fc   : > { %2398 = vmatpush2.bf16.msra.mxu0 %v4575_v55  ;;  %2439 = vmatpush2.bf16.msra.mxu1 %v4578_v56 }
 0x3fd   : > { %2399 = vmatprep.subr.bf16.mxu0 %v4583_v57  ;;  %2440 = vmatprep.subr.bf16.mxu1 %v4586_v58 }
 0x400   : > { %2400 = vmatpush2.bf16.msra.mxu0 %v4581_v59  ;;  %2441 = vmatpush2.bf16.msra.mxu1 %v4584_v60  ;;  %v4673_v59 = vld [vmem:[#allocation10 + $0x224] ss:$16 sps:$4 sm:$0xff]  }
 0x401   : > { %3267 = vmatprep.subr.bf16.mxu0 %v4589_v61  ;;  %3308 = vmatprep.subr.bf16.mxu1 %v4637_v30  ;;  %v4671_v61 = vld [vmem:[#allocation10 + $0x220] ss:$16 sps:$4 sm:$0xff]  }
 0x403   : > { %2402 = vmatmul.mubr.bf16.vlgmr.msra.gmra.mxu0 %v5333_v10  ;;  %v1517_v0 = vpop.f32.mrf.mxu0  ;;  %2443 = vmatmul.mubr.bf16.vlgmr.msra.gmra.mxu1 %v5335_v11  ;;  %v1558_v1 = vpop.f32.mrf.mxu1  ;;  %v4598_v10 = vld [vmem:[#allocation10 + $0x84] ss:$16 sps:$4 sm:$0xff]   ;;  %v4596_v11 = vld [vmem:[#allocation10 + $0x80] ss:$16 sps:$4 sm:$0xff]  }
 0x404   : > { %3268 = vmatpush1.bf16.msra.mxu0 %v4587_v62  ;;  %v5366_v45 = vadd.f32 %v1558_v1, %v1517_v0  ;;  %3309 = vmatpush1.bf16.msra.mxu1 %v4635_v32  ;;  %v4679_v0 = vld [vmem:[#allocation10 + $0x204] ss:$16 sps:$4 sm:$0xff]   ;;  %v4677_v1 = vld [vmem:[#allocation10 + $0x200] ss:$16 sps:$4 sm:$0xff]  }
 0x405   : > { %v1519_v50 = vpop.f32.mrf.mxu0  ;;  %3269 = vmatprep.subr.bf16.mxu0 %v4592_v63  ;;  %v1560_v4 = vpop.f32.mrf.mxu1  ;;  %3310 = vmatprep.subr.bf16.mxu1 %v4643_v35  ;;  %v4817_v35 = vld [vmem:[%s5309_s2 + $0x8] sm:$0xff] }
 0x406   : > { %v5368_v6 = vadd.f32 %v1560_v4, %v1519_v50  ;;  %v4683_v50 = vld [vmem:[#allocation10 + $0x3e0] ss:$16 sps:$4 sm:$0xff]  }
 0x407   : > { %v1521_v7 = vpop.f32.mrf.mxu0  ;;  %v1562_v8 = vpop.f32.mrf.mxu1  ;;  %v4689_v4 = vld [vmem:[#allocation10 + $0x3c0] ss:$16 sps:$4 sm:$0xff]  }
 0x408   : > { %3270 = vmatpush1.bf16.msra.mxu0 %v4590_v2  ;;  %3311 = vmatpush1.bf16.msra.mxu1 %v4641_v34  ;;  %v4685_v2 = vld [vmem:[#allocation10 + $0x3e4] ss:$16 sps:$4 sm:$0xff]   ;;  %v4695_v8 = vld [vmem:[#allocation10 + $0x3a0] ss:$16 sps:$4 sm:$0xff]  }
 0x409   : > { %v1522_v13 = vpop.f32.mrf.mxu0  ;;  %3271 = vmatprep.subr.bf16.mxu0 %v4595_v3  ;;  %v1563_v14 = vpop.f32.mrf.mxu1  ;;  %3312 = vmatprep.subr.bf16.mxu1 %v4649_v39  ;;  %v4691_v3 = vld [vmem:[#allocation10 + $0x3c4] ss:$16 sps:$4 sm:$0xff]  }
 0x40a   : > { %v4697_v7 = vld [vmem:[#allocation10 + $0x3a4] ss:$16 sps:$4 sm:$0xff]   ;;  %v4701_v13 = vld [vmem:[#allocation10 + $0x380] ss:$16 sps:$4 sm:$0xff]  }
 0x40b   : > { %v4709_v14 = vld [vmem:[#allocation10 + $0x364] ss:$16 sps:$4 sm:$0xff]  }
 0x40c   : > { %3272 = vmatpush1.bf16.msra.mxu0 %v4593_v12  ;;  %3313 = vmatpush1.bf16.msra.mxu1 %v4647_v38  ;;  %v4703_v12 = vld [vmem:[#allocation10 + $0x384] ss:$16 sps:$4 sm:$0xff]  }
 0x40d   : > { %3273 = vmatprep.subr.bf16.mxu0 %v4598_v10  ;;  %3314 = vmatprep.subr.bf16.mxu1 %v4655_v43  ;;  %v4707_v10 = vld [vmem:[#allocation10 + $0x360] ss:$16 sps:$4 sm:$0xff]  }
 0x410   : > { %3274 = vmatpush1.bf16.msra.mxu0 %v4596_v11  ;;  %3315 = vmatpush1.bf16.msra.mxu1 %v4653_v42  ;;  %v4713_v11 = vld [vmem:[#allocation10 + $0x340] ss:$16 sps:$4 sm:$0xff]  }
 0x411   : > { %3275 = vmatprep.subr.bf16.mxu0 %v4601_v5  ;;  %3316 = vmatprep.subr.bf16.mxu1 %v4661_v48  ;;  %v4715_v5 = vld [vmem:[#allocation10 + $0x344] ss:$16 sps:$4 sm:$0xff]  }
 0x414   : > { %3276 = vmatpush1.bf16.msra.mxu0 %v4599_v9  ;;  %3317 = vmatpush1.bf16.msra.mxu1 %v4659_v47  ;;  %v4719_v9 = vld [vmem:[#allocation10 + $0x320] ss:$16 sps:$4 sm:$0xff]  }
 0x415   : > { %3277 = vmatprep.subr.bf16.mxu0 %v4604_v15  ;;  %3318 = vmatprep.subr.bf16.mxu1 %v4667_v51  ;;  %v4721_v15 = vld [vmem:[#allocation10 + $0x324] ss:$16 sps:$4 sm:$0xff]  }
 0x418   : > { %3278 = vmatpush1.bf16.msra.mxu0 %v4602_v16  ;;  %3319 = vmatpush1.bf16.msra.mxu1 %v4665_v53  ;;  %v4725_v16 = vld [vmem:[#allocation10 + $0x300] ss:$16 sps:$4 sm:$0xff]  }
 0x419   : > { %3279 = vmatprep.subr.bf16.mxu0 %v4607_v17  ;;  %3320 = vmatprep.subr.bf16.mxu1 %v4673_v59  ;;  %v4727_v17 = vld [vmem:[#allocation10 + $0x304] ss:$16 sps:$4 sm:$0xff]   ;;  %v4644_v59 = vld [vmem:[#allocation10 + $0xc8] ss:$16 sps:$4 sm:$0xff]  }
 0x41c   : > { %3280 = vmatpush1.bf16.msra.mxu0 %v4605_v18  ;;  %3321 = vmatpush1.bf16.msra.mxu1 %v4671_v61  ;;  %v4733_v18 = vld [vmem:[#allocation10 + $0x2ec] ss:$16 sps:$4 sm:$0xff]   ;;  %v4650_v61 = vld [vmem:[#allocation10 + $0xa8] ss:$16 sps:$4 sm:$0xff]  }
 0x41d   : > { %3281 = vmatprep.subr.bf16.mxu0 %v4610_v19  ;;  %3322 = vmatprep.subr.bf16.mxu1 %v4679_v0  ;;  %v4664_v0 = vld [vmem:[#allocation10 + $0x6c] ss:$16 sps:$4 sm:$0xff]  }
 0x420   : > { %3282 = vmatpush1.bf16.msra.mxu0 %v4608_v20  ;;  %3323 = vmatpush1.bf16.msra.mxu1 %v4677_v1  ;;  %v4662_v1 = vld [vmem:[#allocation10 + $0x68] ss:$16 sps:$4 sm:$0xff]  }
 0x421   : > { %3283 = vmatprep.subr.bf16.mxu0 %v4613_v21  ;;  %3324 = vmatprep.subr.bf16.mxu1 %v4685_v2  ;;  %v4670_v2 = vld [vmem:[#allocation10 + $0x4c] ss:$16 sps:$4 sm:$0xff]  }
 0x424   : > { %3284 = vmatpush2.bf16.msra.mxu0 %v4611_v22  ;;  %3325 = vmatpush2.bf16.msra.mxu1 %v4683_v50  ;;  %v4668_v50 = vld [vmem:[#allocation10 + $0x48] ss:$16 sps:$4 sm:$0xff]  }
 0x425   : > { %3285 = vmatprep.subr.bf16.mxu0 %v4616_v23  ;;  %3326 = vmatprep.subr.bf16.mxu1 %v4691_v3 }
 0x428   : > { %3286 = vmatpush2.bf16.msra.mxu0 %v4614_v24  ;;  %3327 = vmatpush2.bf16.msra.mxu1 %v4689_v4  ;;  %v4676_v4 = vld [vmem:[#allocation10 + $0x2c] ss:$16 sps:$4 sm:$0xff]  }
 0x429   : > { %3287 = vmatprep.subr.bf16.mxu0 %v4619_v25  ;;  %3328 = vmatprep.subr.bf16.mxu1 %v4697_v7 }
 0x42c   : > { %3288 = vmatpush2.bf16.msra.mxu0 %v4617_v26  ;;  %3329 = vmatpush2.bf16.msra.mxu1 %v4695_v8 }
 0x42d   : > { %3289 = vmatprep.subr.bf16.mxu0 %v4622_v27  ;;  %3330 = vmatprep.subr.bf16.mxu1 %v4703_v12 }
 0x430   : > { %3290 = vmatpush2.bf16.msra.mxu0 %v4620_v28  ;;  %3331 = vmatpush2.bf16.msra.mxu1 %v4701_v13 }
 0x431   : > { %3291 = vmatprep.subr.bf16.mxu0 %v4625_v29  ;;  %3332 = vmatprep.subr.bf16.mxu1 %v4709_v14 }
 0x434   : > { %3292 = vmatpush2.bf16.msra.mxu0 %v4623_v31  ;;  %3333 = vmatpush2.bf16.msra.mxu1 %v4707_v10 }
 0x435   : > { %3293 = vmatprep.subr.bf16.mxu0 %v4628_v33  ;;  %3334 = vmatprep.subr.bf16.mxu1 %v4715_v5  ;;  %v4815_v33 = vld [vmem:[%s5309_s2] sm:$0xff] }
 0x438   : > { %3294 = vmatpush2.bf16.msra.mxu0 %v4626_v36  ;;  %3335 = vmatpush2.bf16.msra.mxu1 %v4713_v11  ;;  %v4818_v36 = vld [vmem:[%s5344_s8 + $0x8] sm:$0xff] }
 0x439   : > { %3295 = vmatprep.subr.bf16.mxu0 %v4631_v37  ;;  %3336 = vmatprep.subr.bf16.mxu1 %v4721_v15  ;;  %v2476_v37 = vadd.f32 %v4818_v36, %v4817_v35  ;;  %v4674_v11 = vld [vmem:[#allocation10 + $0x28] ss:$16 sps:$4 sm:$0xff]  }
 0x43c   : > { %3296 = vmatpush2.bf16.msra.mxu0 %v4629_v40  ;;  %3337 = vmatpush2.bf16.msra.mxu1 %v4719_v9  ;;  %v4682_v9 = vld [vmem:[#allocation10 + $0xc] ss:$16 sps:$4 sm:$0xff]  }
 0x43d   : > { %3297 = vmatprep.subr.bf16.mxu0 %v4634_v41  ;;  %3338 = vmatprep.subr.bf16.mxu1 %v4727_v17 }
 0x440   : > { %3298 = vmatpush2.bf16.msra.mxu0 %v4632_v44  ;;  %3339 = vmatpush2.bf16.msra.mxu1 %v4725_v16 }
 0x441   : > { %3349 = vmatprep.subr.bf16.mxu0 %v4640_v46  ;;  %3390 = vmatprep.subr.bf16.mxu1 %v4733_v18 }
 0x443   : > { %v1599_v49 = vpop.f32.mrf.mxu0  ;;  %v1640_v52 = vpop.f32.mrf.mxu1 }
 0x444   : > { %v5370_v54 = vadd.f32 %v1640_v52, %v1599_v49 }
 0x445   : > { %v1601_v55 = vpop.f32.mrf.mxu0  ;;  %v1642_v56 = vpop.f32.mrf.mxu1 }
 0x446   : > { %v5372_v57 = vadd.f32 %v1642_v56, %v1601_v55  ;;  %v4638_v55 = vld [vmem:[#allocation10 + $0xe8] ss:$16 sps:$4 sm:$0xff]  }
 0x447   : > { %v1603_v58 = vpop.f32.mrf.mxu0  ;;  %v1644_v60 = vpop.f32.mrf.mxu1 }
 0x448   : > { %v4646_v58 = vld [vmem:[#allocation10 + $0xcc] ss:$16 sps:$4 sm:$0xff]  }
 0x449   : > { %v1604_v62 = vpop.f32.mrf.mxu0  ;;  %v1645_v63 = vpop.f32.mrf.mxu1  ;;  %v4652_v60 = vld [vmem:[#allocation10 + $0xac] ss:$16 sps:$4 sm:$0xff]  }
 0x44a   : > { %v4658_v62 = vld [vmem:[#allocation10 + $0x8c] ss:$16 sps:$4 sm:$0xff]   ;;  %v4656_v63 = vld [vmem:[#allocation10 + $0x88] ss:$16 sps:$4 sm:$0xff]  }
 0x483   : > { %v2321_v19 = vpop.f32.mrf.mxu0  ;;  %v2362_v21 = vpop.f32.mrf.mxu1 }
 0x484   : > { %v2322_v20 = vadd.f32 %v2321_v19, %v5366_v45  ;;  %v4816_v45 = vld [vmem:[%s5344_s8] sm:$0xff] }
 0x485   : > { %v2323_v22 = vpop.f32.mrf.mxu0  ;;  %v2364_v25 = vpop.f32.mrf.mxu1  ;;  %v2475_v34 = vadd.f32 %v4816_v45, %v4815_v33 }
 0x486   : > { %v2363_v23 = vadd.f32 %v2362_v21, %v2322_v20  ;;  %v2324_v24 = vadd.f32 %v2323_v22, %v5368_v6  ;;  %v4680_v20 = vld [vmem:[#allocation10 + $0x8] ss:$16 sps:$4 sm:$0xff]   ;;  %v4694_v22 = vld [vmem:[#allocation10 + $0x1cc] ss:$16 sps:$4 sm:$0xff]  }
 0x487   : > { %v2325_v26 = vpop.f32.mrf.mxu0  ;;  %v2366_v29 = vpop.f32.mrf.mxu1  ;;  %v4686_v21 = vld [vmem:[#allocation10 + $0x1e8] ss:$16 sps:$4 sm:$0xff]  }
 0x488   : > { %v3950_v27 = vmul.f32 -1.442695, %v2363_v23  ;;  %v2365_v28 = vadd.f32 %v2364_v25, %v2324_v24  ;;  %v4819_v23 = vld [vmem:[%s5309_s2 + $0x10] sm:$0xff]  ;;  %v4692_v26 = vld [vmem:[#allocation10 + $0x1c8] ss:$16 sps:$4 sm:$0xff]  }
 0x489   : > { %v2326_v30 = vpop.f32.mrf.mxu0  ;;  %v2367_v32 = vpop.f32.mrf.mxu1  ;;  %v4820_v24 = vld [vmem:[%s5344_s8 + $0x10] sm:$0xff]  ;;  %v4822_v29 = vld [vmem:[%s5344_s8 + $0x18] sm:$0xff] }
 0x48a   : > { %4783 = vpow2.f32 %v3950_v27  ;;  %v3951_v31 = vmul.f32 -1.442695, %v2365_v28  ;;  %v2477_v25 = vadd.f32 %v4820_v24, %v4819_v23  ;;  %v4700_v27 = vld [vmem:[#allocation10 + $0x1ac] ss:$16 sps:$4 sm:$0xff]  }
 0x48b   : > { %v4821_v28 = vld [vmem:[%s5309_s2 + $0x18] sm:$0xff]  ;;  %s4959_s2 = sshll.u32 %s5093_s30, 4  ;;  %s4960_s2 = int_to_ptr.vmem [resolvable:$false] %s4959_s2 }
 0x48c   : > { %4785 = vpow2.f32 %v3951_v31  ;;  %v2478_v30 = vadd.f32 %v4822_v29, %v4821_v28  ;;  %v4698_v31 = vld [vmem:[#allocation10 + $0x1a8] ss:$16 sps:$4 sm:$0xff]   ;;  %s4961_s17 = scalar_lea.vmem %s4960_s2, 1024  ;;  %p4962_p12 = scmp.lt.s32.totalorder %s3487_s9, %s4960_s2 }
 0x48d   : > { %4787 = vtanh.f32 %v2475_v34  ;;  %p4963_p2 = scmp.lt.s32.totalorder %s4961_s17, %s4955_s1 }
 0x48e   : > { %4789 = vtanh.f32 %v2476_v37  ;;  %v4712_v37 = vld [vmem:[#allocation10 + $0x16c] ss:$16 sps:$4 sm:$0xff]  }
 0x48f   : > { %p4964_p9 = por %p4963_p2, %p4962_p12 }
 0x491   : > { %p4965_p11 = pnand %p4964_p9, %p4958_p0 }
 0x497   : > { %v4784_v38 = vpop.eup %4783 }
 0x498   : > { %v2463_v6 = vadd.f32 1.0, %v4784_v38  ;;  %v4710_v38 = vld [vmem:[#allocation10 + $0x168] ss:$16 sps:$4 sm:$0xff]  }
 0x499   : > { %v4786_v39 = vpop.eup %4785 }
 0x49a   : > { %4791 = vrcp.f32 %v2463_v6  ;;  %v2464_v40 = vadd.f32 1.0, %v4786_v39  ;;  %v4788_v41 = vpop.eup %4787  ;;  %v4718_v6 = vld [vmem:[#allocation10 + $0x14c] ss:$16 sps:$4 sm:$0xff]   ;;  %v4716_v39 = vld [vmem:[#allocation10 + $0x148] ss:$16 sps:$4 sm:$0xff]  }
 0x49b   : > { %v4790_v42 = vpop.eup %4789  ;;  %v2483_v43 = vadd.f32 %v4815_v33, %v4788_v41  ;;  %v4706_v33 = vld [vmem:[#allocation10 + $0x18c] ss:$16 sps:$4 sm:$0xff]  }
 0x49c   : > { %4793 = vrcp.f32 %v2464_v40  ;;  %v2484_v46 = vadd.f32 %v4817_v35, %v4790_v42  ;;  %v4724_v41 = vld [vmem:[#allocation10 + $0x12c] ss:$16 sps:$4 sm:$0xff]  }
 0x4a7   : > { %v4792_v44 = vpop.eup %4791 }
 0x4a8   : > { %v2487_v47 = vmul.f32 %v4792_v44, %v2483_v43  ;;  %v4722_v43 = vld [vmem:[#allocation10 + $0x128] ss:$16 sps:$4 sm:$0xff]  }
 0x4a9   : > { %v4794_v48 = vpop.eup %4793 }
 0x4aa   : > { %v2488_v49 = vmul.f32 %v4794_v48, %v2484_v46  ;;  %v2491_v51 = vadd.f32 %v4816_v45, %v2487_v47  ;;  %v4730_v47 = vld [vmem:[#allocation10 + $0x10c] ss:$16 sps:$4 sm:$0xff]  }
 0x4ac   : > { %v2492_v52 = vadd.f32 %v4818_v36, %v2488_v49  ;;  %3439 = vst [vmem:[%s5381_s15] sm:$0xff] %v2491_v51  ;;  %v5385_v56 = vpack.c.bf16 %v2491_v51, %v2491_v51  ;;  %v4704_v36 = vld [vmem:[#allocation10 + $0x188] ss:$16 sps:$4 sm:$0xff]  }
 0x4ae   : > { %v2496_v53 = vpack.c.bf16 %v2492_v52, %v2492_v52  ;;  %3440 = vst [vmem:[%s5381_s15 + $0x8] sm:$0xff] %v2492_v52  ;;  %v4728_v52 = vld [vmem:[#allocation10 + $0x108] ss:$16 sps:$4 sm:$0xff]  }
 0x4b0   : > { %3299 = vmatprep.mubr.bf16.mxu0 %v2496_v53 }
 0x4b1   : > { %3300 = vmatmul.mubr.bf16.vlgmr.msra.gmra.mxu0 %v5385_v56 }
 0x4b2   : > { %3350 = vmatpush1.bf16.msra.mxu0 %v4638_v55  ;;  %3381 = vmatprep.mubr.bf16.mxu0 %v2496_v53 }
 0x4b3   : > { %3351 = vmatprep.subr.bf16.mxu0 %v4646_v58 }
 0x4b6   : > { %3352 = vmatpush1.bf16.msra.mxu0 %v4644_v59 }
 0x4b7   : > { %3353 = vmatprep.subr.bf16.mxu0 %v4652_v60  ;;  %v4731_v60 = vld [vmem:[#allocation10 + $0x2e8] ss:$16 sps:$4 sm:$0xff]  }
 0x4ba   : > { %3354 = vmatpush1.bf16.msra.mxu0 %v4650_v61 }
 0x4bb   : > { %3355 = vmatprep.subr.bf16.mxu0 %v4658_v62  ;;  %v4736_v62 = vld [vmem:[#allocation10 + $0x2cc] ss:$16 sps:$4 sm:$0xff]  }
 0x4be   : > { %3356 = vmatpush1.bf16.msra.mxu0 %v4656_v63  ;;  %v4734_v63 = vld [vmem:[#allocation10 + $0x2c8] ss:$16 sps:$4 sm:$0xff]  }
 0x4bf   : > { %3357 = vmatprep.subr.bf16.mxu0 %v4664_v0  ;;  %v4739_v0 = vld [vmem:[#allocation10 + $0x2ac] ss:$16 sps:$4 sm:$0xff]  }
 0x4c2   : > { %3358 = vmatpush1.bf16.msra.mxu0 %v4662_v1  ;;  %v4737_v1 = vld [vmem:[#allocation10 + $0x2a8] ss:$16 sps:$4 sm:$0xff]  }
 0x4c3   : > { %v2403_v3 = vpop.f32.mrf.mxu0  ;;  %3359 = vmatprep.subr.bf16.mxu0 %v4670_v2  ;;  %v2444_v8 = vpop.f32.mrf.mxu1  ;;  %v4742_v2 = vld [vmem:[#allocation10 + $0x28c] ss:$16 sps:$4 sm:$0xff]  }
 0x4c4   : > { %v2404_v7 = vadd.f32 %v2403_v3, %v5370_v54  ;;  %v4745_v3 = vld [vmem:[#allocation10 + $0x26c] ss:$16 sps:$4 sm:$0xff]  }
 0x4c5   : > { %v2405_v12 = vpop.f32.mrf.mxu0  ;;  %v2446_v14 = vpop.f32.mrf.mxu1 }
 0x4c6   : > { %v2445_v13 = vadd.f32 %v2444_v8, %v2404_v7  ;;  %v2406_v10 = vadd.f32 %v2405_v12, %v5372_v57  ;;  %3360 = vmatpush1.bf16.msra.mxu0 %v4668_v50  ;;  %v4688_v57 = vld [vmem:[#allocation10 + $0x1ec] ss:$16 sps:$4 sm:$0xff]   ;;  %v4740_v50 = vld [vmem:[#allocation10 + $0x288] ss:$16 sps:$4 sm:$0xff]  }
 0x4c7   : > { %v2407_v5 = vpop.f32.mrf.mxu0  ;;  %3361 = vmatprep.subr.bf16.mxu0 %v4676_v4  ;;  %v2448_v17 = vpop.f32.mrf.mxu1  ;;  %v4743_v4 = vld [vmem:[#allocation10 + $0x268] ss:$16 sps:$4 sm:$0xff]   ;;  %v4748_v7 = vld [vmem:[#allocation10 + $0x24c] ss:$16 sps:$4 sm:$0xff]  }
 0x4c8   : > { %v3952_v15 = vmul.f32 -1.442695, %v2445_v13  ;;  %v2447_v16 = vadd.f32 %v2446_v14, %v2406_v10  ;;  %v4751_v8 = vld [vmem:[#allocation10 + $0x22c] ss:$16 sps:$4 sm:$0xff]   ;;  %v4749_v12 = vld [vmem:[#allocation10 + $0x228] ss:$16 sps:$4 sm:$0xff]  }
 0x4c9   : > { %v2408_v18 = vpop.f32.mrf.mxu0  ;;  %v2449_v54 = vpop.f32.mrf.mxu1  ;;  %v4754_v13 = vld [vmem:[#allocation10 + $0x20c] ss:$16 sps:$4 sm:$0xff]   ;;  %v4752_v10 = vld [vmem:[#allocation10 + $0x208] ss:$16 sps:$4 sm:$0xff]  }
 0x4ca   : > { %4795 = vpow2.f32 %v3952_v15  ;;  %v3953_v19 = vmul.f32 -1.442695, %v2447_v16  ;;  %3362 = vmatpush1.bf16.msra.mxu0 %v4674_v11  ;;  %v4757_v14 = vld [vmem:[#allocation10 + $0x3ec] ss:$16 sps:$4 sm:$0xff]   ;;  %v4755_v11 = vld [vmem:[#allocation10 + $0x3e8] ss:$16 sps:$4 sm:$0xff]  }
 0x4cb   : > { %3363 = vmatprep.subr.bf16.mxu0 %v4682_v9  ;;  %v4760_v5 = vld [vmem:[#allocation10 + $0x3cc] ss:$16 sps:$4 sm:$0xff]   ;;  %v4758_v9 = vld [vmem:[#allocation10 + $0x3c8] ss:$16 sps:$4 sm:$0xff]  }
 0x4cc   : > { %4797 = vpow2.f32 %v3953_v19  ;;  %v4763_v15 = vld [vmem:[#allocation10 + $0x3ac] ss:$16 sps:$4 sm:$0xff]   ;;  %v4761_v16 = vld [vmem:[#allocation10 + $0x3a8] ss:$16 sps:$4 sm:$0xff]  }
 0x4cd   : > { %4799 = vtanh.f32 %v2477_v25  ;;  %v4766_v17 = vld [vmem:[#allocation10 + $0x38c] ss:$16 sps:$4 sm:$0xff]   ;;  %v4764_v18 = vld [vmem:[#allocation10 + $0x388] ss:$16 sps:$4 sm:$0xff]  }
 0x4ce   : > { %3364 = vmatpush1.bf16.msra.mxu0 %v4680_v20  ;;  %4801 = vtanh.f32 %v2478_v30  ;;  %v4769_v19 = vld [vmem:[#allocation10 + $0x36c] ss:$16 sps:$4 sm:$0xff]   ;;  %v4767_v54 = vld [vmem:[#allocation10 + $0x368] ss:$16 sps:$4 sm:$0xff]  }
 0x4cf   : > { %3365 = vmatprep.subr.bf16.mxu0 %v4688_v57  ;;  %v4772_v20 = vld [vmem:[#allocation10 + $0x34c] ss:$16 sps:$4 sm:$0xff]   ;;  %v4770_v57 = vld [vmem:[#allocation10 + $0x348] ss:$16 sps:$4 sm:$0xff]  }
 0x4d2   : > { %3366 = vmatpush2.bf16.msra.mxu0 %v4686_v21  ;;  %v4775_v21 = vld [vmem:[#allocation10 + $0x32c] ss:$16 sps:$4 sm:$0xff]  }
 0x4d3   : > { %3367 = vmatprep.subr.bf16.mxu0 %v4694_v22  ;;  %v4773_v22 = vld [vmem:[#allocation10 + $0x328] ss:$16 sps:$4 sm:$0xff]  }
 0x4d6   : > { %3368 = vmatpush2.bf16.msra.mxu0 %v4692_v26 }
 0x4d7   : > { %v4796_v32 = vpop.eup %4795  ;;  %3369 = vmatprep.subr.bf16.mxu0 %v4700_v27 }
 0x4d8   : > { %v2465_v45 = vadd.f32 1.0, %v4796_v32 }
 0x4d9   : > { %v4798_v34 = vpop.eup %4797 }
 0x4da   : > { %4803 = vrcp.f32 %v2465_v45  ;;  %v2466_v35 = vadd.f32 1.0, %v4798_v34  ;;  %3370 = vmatpush2.bf16.msra.mxu0 %v4698_v31  ;;  %v4800_v40 = vpop.eup %4799 }
 0x4db   : > { %3371 = vmatprep.subr.bf16.mxu0 %v4706_v33  ;;  %v4802_v42 = vpop.eup %4801  ;;  %v2485_v44 = vadd.f32 %v4819_v23, %v4800_v40  ;;  %v4778_v23 = vld [vmem:[#allocation10 + $0x30c] ss:$16 sps:$4 sm:$0xff]  }
 0x4dc   : > { %4805 = vrcp.f32 %v2466_v35  ;;  %v2486_v48 = vadd.f32 %v4821_v28, %v4802_v42 }
 0x4de   : > { %3372 = vmatpush2.bf16.msra.mxu0 %v4704_v36 }
 0x4df   : > { %3373 = vmatprep.subr.bf16.mxu0 %v4712_v37 }
 0x4e2   : > { %3374 = vmatpush2.bf16.msra.mxu0 %v4710_v38 }
 0x4e3   : > { %3375 = vmatprep.subr.bf16.mxu0 %v4718_v6 }
 0x4e6   : > { %3376 = vmatpush2.bf16.msra.mxu0 %v4716_v39 }
 0x4e7   : > { %v4804_v46 = vpop.eup %4803  ;;  %3377 = vmatprep.subr.bf16.mxu0 %v4724_v41 }
 0x4e8   : > { %v2489_v49 = vmul.f32 %v4804_v46, %v2485_v44 }
 0x4e9   : > { %v4806_v51 = vpop.eup %4805 }
 0x4ea   : > { %3378 = vmatpush2.bf16.msra.mxu0 %v4722_v43  ;;  %v2490_v53 = vmul.f32 %v4806_v51, %v2486_v48  ;;  %v2493_v55 = vadd.f32 %v4820_v24, %v2489_v49  ;;  %v4776_v24 = vld [vmem:[#allocation10 + $0x308] ss:$16 sps:$4 sm:$0xff]  }
 0x4eb   : > { %3379 = vmatprep.subr.bf16.mxu0 %v4730_v47 }
 0x4ec   : > { %v2494_v58 = vadd.f32 %v4822_v29, %v2490_v53  ;;  %3441 = vst [vmem:[%s5381_s15 + $0x10] sm:$0xff] %v2493_v55  ;;  %v5396_v61 = vpack.c.bf16 %v2493_v55, %v2493_v55 }
 0x4ee   : > { %3380 = vmatpush2.bf16.msra.mxu0 %v4728_v52  ;;  %v2498_v59 = vpack.c.bf16 %v2494_v58, %v2494_v58  ;;  %3442 = vst [vmem:[%s5381_s15 + $0x18] sm:$0xff] %v2494_v58 }
 0x4f0   : > { %3340 = vmatprep.mubr.bf16.mxu1 %v2498_v59 }
 0x4f1   : > { %3382 = vmatmul.mubr.bf16.vlgmr.msra.gmra.mxu0 %v5385_v56  ;;  %3341 = vmatmul.mubr.bf16.vlgmr.msra.gmra.mxu1 %v5396_v61  ;;  %v4746_v56 = vld [vmem:[#allocation10 + $0x248] ss:$16 sps:$4 sm:$0xff]  }
 0x4f2   : > { %3391 = vmatpush1.bf16.msra.mxu1 %v4731_v60  ;;  %3422 = vmatprep.mubr.bf16.mxu1 %v2498_v59 }
 0x4f3   : > { %3392 = vmatprep.subr.bf16.mxu1 %v4736_v62 }
 0x4f6   : > { %3393 = vmatpush1.bf16.msra.mxu1 %v4734_v63 }
 0x4f7   : > { %3394 = vmatprep.subr.bf16.mxu1 %v4739_v0 }
 0x4fa   : > { %3395 = vmatpush1.bf16.msra.mxu1 %v4737_v1 }
 0x4fb   : > { %3396 = vmatprep.subr.bf16.mxu1 %v4742_v2 }
 0x4fe   : > { %3397 = vmatpush1.bf16.msra.mxu1 %v4740_v50 }
 0x4ff   : > { %3398 = vmatprep.subr.bf16.mxu1 %v4745_v3 }
 0x502   : > { %3399 = vmatpush1.bf16.msra.mxu1 %v4743_v4 }
 0x503   : > { %3400 = vmatprep.subr.bf16.mxu1 %v4748_v7 }
 0x506   : > { %3401 = vmatpush1.bf16.msra.mxu1 %v4746_v56 }
 0x507   : > { %3402 = vmatprep.subr.bf16.mxu1 %v4751_v8 }
 0x50a   : > { %3403 = vmatpush1.bf16.msra.mxu1 %v4749_v12 }
 0x50b   : > { %3404 = vmatprep.subr.bf16.mxu1 %v4754_v13 }
 0x50e   : > { %3405 = vmatpush1.bf16.msra.mxu1 %v4752_v10 }
 0x50f   : > { %3406 = vmatprep.subr.bf16.mxu1 %v4757_v14 }
 0x512   : > { %3407 = vmatpush2.bf16.msra.mxu1 %v4755_v11 }
 0x513   : > { %3408 = vmatprep.subr.bf16.mxu1 %v4760_v5 }
 0x516   : > { %3409 = vmatpush2.bf16.msra.mxu1 %v4758_v9 }
 0x517   : > { %3410 = vmatprep.subr.bf16.mxu1 %v4763_v15 }
 0x51a   : > { %3411 = vmatpush2.bf16.msra.mxu1 %v4761_v16 }
 0x51b   : > { %3412 = vmatprep.subr.bf16.mxu1 %v4766_v17 }
 0x51e   : > { %3413 = vmatpush2.bf16.msra.mxu1 %v4764_v18 }
 0x51f   : > { %3414 = vmatprep.subr.bf16.mxu1 %v4769_v19 }
 0x522   : > { %3415 = vmatpush2.bf16.msra.mxu1 %v4767_v54 }
 0x523   : > { %3416 = vmatprep.subr.bf16.mxu1 %v4772_v20 }
 0x526   : > { %3417 = vmatpush2.bf16.msra.mxu1 %v4770_v57 }
 0x527   : > { %3418 = vmatprep.subr.bf16.mxu1 %v4775_v21 }
 0x52a   : > { %3419 = vmatpush2.bf16.msra.mxu1 %v4773_v22 }
 0x52b   : > { %3420 = vmatprep.subr.bf16.mxu1 %v4778_v23 }
 0x52e   : > { %3421 = vmatpush2.bf16.msra.mxu1 %v4776_v24 }
 0x531   : > { %3423 = vmatmul.mubr.bf16.vlgmr.msra.gmra.mxu1 %v5396_v61 }
 0x571   : > { %v5401_v25 = vpop.f32.mrf.mxu0 }
 0x573   : > { %v5403_v26 = vpop.f32.mrf.mxu0 }
 0x575   : > { %v3305_v27 = vpop.f32.mrf.mxu0 }
 0x577   : > { %v3306_v28 = vpop.f32.mrf.mxu0 }
 0x578   : > { %4968 = shalt.err (!%p4965_p11)
}
 0x579   : > { %s4969_s15 = scalar_lea.hbm %s5413_s29, 512  ;;  %s4973_s23 = scalar_lea.hbm %s5505_s6, 1024 }
 0x57a   : > { %p4970_p13 = scmp.ne.s32.totalorder %s5413_s29, %s4969_s15  ;;  %p4974_p4 = scmp.lt.s32.totalorder %s5413_s29, %s5505_s6 }
 0x57b   : > { %p4975_p6 = scmp.lt.s32.totalorder %s4973_s23, %s4969_s15 }
 0x57c   : > { %p4971_p1 = pnand %p4970_p13, %p5529_p7 }
 0x57d   : > { %p4976_p5 = por %p4975_p6, %p4974_p4 }
 0x57e   : > { %p4972_p3 = pneg %p4971_p1 }
 0x580   : > { %p4977_p8 = pnand %p4976_p5, %p4972_p3 }
 0x582   : > { %4980 = shalt.err (!%p4977_p8)
}
 0x583   : > { %4116 = dma.vmem_to_hbm [thread:$0]  (%p5529_p7), %s3487_s9, 512, %s5413_s29, %s5422_s16  }
 0x584   : > { %s3472_s1 = sshll.u32 %s5344_s8, 4  ;;  %s3448_s2 = scalar_lea.sflag [#allocation4], %s5302_s11  ;;  %s3473_s1 = int_to_ptr.vmem [resolvable:$true] %s3472_s1 }
 0x585   : > { %s4981_s17 = scalar_lea.vmem %s3473_s1, 512  ;;  %s5094_s15 = smov [#allocation11]  }
 0x586   : > { %p4982_p10 = scmp.ne.s32.totalorder %s3473_s1, %s4981_s17  ;;  %s4985_s10 = sshll.u32 %s5094_s15, 4  ;;  %s4986_s10 = int_to_ptr.vmem [resolvable:$false] %s4985_s10 }
 0x587   : > { %s4987_s18 = scalar_lea.vmem %s4986_s10, 1024  ;;  %p4988_p2 = scmp.lt.s32.totalorder %s3473_s1, %s4986_s10 }
 0x588   : > { %p4983_p0 = pnand %p4982_p10, %p5529_p7  ;;  %p4989_p9 = scmp.lt.s32.totalorder %s4987_s18, %s4981_s17 }
 0x58a   : > { %p4984_p12 = pneg %p4983_p0  ;;  %p4990_p11 = por %p4989_p9, %p4988_p2 }
 0x58c   : > { %p4991_p13 = pnand %p4990_p11, %p4984_p12 }
 0x58e   : > { %4994 = shalt.err (!%p4991_p13)
}
 0x58f   : > { %s4995_s8 = scalar_lea.hbm %s5420_s20, 512  ;;  %s4999_s9 = scalar_lea.hbm %s5504_s5, 1024 }
 0x590   : > { %p4996_p1 = scmp.ne.s32.totalorder %s5420_s20, %s4995_s8  ;;  %p5000_p6 = scmp.lt.s32.totalorder %s5420_s20, %s5504_s5 }
 0x591   : > { %p5001_p5 = scmp.lt.s32.totalorder %s4999_s9, %s4995_s8 }
 0x592   : > { %p4997_p3 = pnand %p4996_p1, %p5529_p7 }
 0x593   : > { %p5002_p8 = por %p5001_p5, %p5000_p6 }
 0x594   : > { %p4998_p4 = pneg %p4997_p3 }
 0x596   : > { %p5003_p10 = pnand %p5002_p8, %p4998_p4 }
 0x598   : > { %5006 = shalt.err (!%p5003_p10)
}
 0x599   : > { %4115 = dma.vmem_to_hbm [thread:$0]  (%p5529_p7), %s3473_s1, 512, %s5420_s20, %s3448_s2  }
 0x59a   : > { %s370_s30 = scalar_lea.vmem [#allocation14], %s5305_s28  ;;  %s3498_s17 = scalar_lea.hbm %s5506_s7, %s5407_s13 }
 0x59b   : > { %s3500_s20 = sshll.u32 %s370_s30, 4  ;;  %s5095_s15 = smov [#allocation14]   ;;  %s3501_s20 = int_to_ptr.vmem [resolvable:$true] %s3500_s20 }
 0x59c   : > { %s5007_s28 = scalar_lea.vmem %s3501_s20, 512  ;;  %s5011_s10 = sshll.u32 %s5095_s15, 4  ;;  %s5012_s10 = int_to_ptr.vmem [resolvable:$false] %s5011_s10 }
 0x59d   : > { %p5008_p0 = scmp.ne.s32.totalorder %s3501_s20, %s5007_s28  ;;  %s5013_s18 = scalar_lea.vmem %s5012_s10, 1024 }
 0x59e   : > { %p5014_p9 = scmp.lt.s32.totalorder %s3501_s20, %s5012_s10  ;;  %p5015_p11 = scmp.lt.s32.totalorder %s5013_s18, %s5007_s28 }
 0x59f   : > { %p5009_p12 = pnand %p5008_p0, %p5529_p7 }
 0x5a0   : > { %p5016_p13 = por %p5015_p11, %p5014_p9 }
 0x5a1   : > { %p5010_p2 = pneg %p5009_p12 }
 0x5a3   : > { %p5017_p1 = pnand %p5016_p13, %p5010_p2 }
 0x5b1   : > { %v3383_v29 = vpop.f32.mrf.mxu0  ;;  %v3342_v30 = vpop.f32.mrf.mxu1 }
 0x5b2   : > { %v3343_v31 = vadd.f32 %v3342_v30, %v5401_v25 }
 0x5b3   : > { %v3385_v32 = vpop.f32.mrf.mxu0  ;;  %v3344_v33 = vpop.f32.mrf.mxu1 }
 0x5b4   : > { %4807 = vtanh.f32 %v3343_v31  ;;  %v3345_v45 = vadd.f32 %v3344_v33, %v5403_v26 }
 0x5b5   : > { %v3387_v34 = vpop.f32.mrf.mxu0  ;;  %v3346_v35 = vpop.f32.mrf.mxu1 }
 0x5b6   : > { %4809 = vtanh.f32 %v3345_v45 }
 0x5b7   : > { %v3388_v36 = vpop.f32.mrf.mxu0  ;;  %v3347_v37 = vpop.f32.mrf.mxu1 }
 0x5c1   : > { %v4808_v38 = vpop.eup %4807 }
 0x5c2   : > { %3443 = vst [vmem:[%s370_s30] sm:$0xff] %v4808_v38 }
 0x5c3   : > { %v4810_v6 = vpop.eup %4809 }
 0x5c4   : > { %3444 = vst [vmem:[%s370_s30 + $0x8] sm:$0xff] %v4810_v6 }
 0x5f1   : > { %v3424_v39 = vpop.f32.mrf.mxu1 }
 0x5f2   : > { %v3425_v40 = vadd.f32 %v3424_v39, %v3383_v29 }
 0x5f3   : > { %v3426_v41 = vpop.f32.mrf.mxu1 }
 0x5f4   : > { %4811 = vtanh.f32 %v3425_v40  ;;  %v3427_v42 = vadd.f32 %v3426_v41, %v3385_v32 }
 0x5f5   : > { %v3428_v43 = vpop.f32.mrf.mxu1 }
 0x5f6   : > { %4813 = vtanh.f32 %v3427_v42 }
 0x5f7   : > { %v3429_v44 = vpop.f32.mrf.mxu1 }
 0x601   : > { %v4812_v46 = vpop.eup %4811 }
 0x602   : > { %3445 = vst [vmem:[%s370_s30 + $0x10] sm:$0xff] %v4812_v46 }
 0x603   : > { %v4814_v47 = vpop.eup %4813 }
 0x604   : > { %3446 = vst [vmem:[%s370_s30 + $0x18] sm:$0xff] %v4814_v47 }
 0x605   : > { %5020 = shalt.err (!%p5017_p1)
}
 0x606   : > { %s5021_s8 = scalar_lea.hbm %s3498_s17, 512  ;;  %s5025_s29 = scalar_lea.hbm %s5506_s7, 1024 }
 0x607   : > { %p5022_p3 = scmp.ne.s32.totalorder %s3498_s17, %s5021_s8  ;;  %p5026_p5 = scmp.lt.s32.totalorder %s3498_s17, %s5506_s7 }
 0x608   : > { %p5027_p8 = scmp.lt.s32.totalorder %s5025_s29, %s5021_s8 }
 0x609   : > { %p5023_p4 = pnand %p5022_p3, %p5529_p7 }
 0x60a   : > { %p5028_p10 = por %p5027_p8, %p5026_p5 }
 0x60b   : > { %p5024_p6 = pneg %p5023_p4 }
 0x60d   : > { %p5029_p0 = pnand %p5028_p10, %p5024_p6 }
 0x60f   : > { %5032 = shalt.err (!%p5029_p0)
}
 0x610   : > { %4117 = dma.vmem_to_hbm [thread:$0]  (%p5529_p7), %s3501_s20, 512, %s3498_s17, %s5422_s16  }
 0x611 PF: > { %s3512_s12 = sand.u32 1, %s5071_s24   ;;  %p5530_p12 = scmp.ne.s32.totalorder %s5521_s22, 0 }
 0x612   : > { %p5531_p2 = scmp.ge.s32.totalorder %s5083_s27, 2  ;;  %s3513_s30 = scalar_lea.sflag [#allocation4], %s3512_s12 }
 0x614   : > { %p4139_p9 = pnand %p5531_p2, %p5530_p12 }
 0x616   : > { %p4140_p11 = pneg %p4139_p9 }
 0x618   : > { %5062 = dma.done.wait (%p4140_p11), %s3513_s30, 512  }
 0x619   : > { %5064 = vsyncadd (%p4140_p11), %s3513_s30, 4294966784  ;;  %s5532_s1 = sadd.s32 4294967294, %s5083_s27  }
 0x61a   : > { %s3521_s2 = sand.u32 1, %s5532_s1  }
 0x61b   : > { %s3522_s28 = scalar_lea.sflag [#allocation13], %s3521_s2 }
 0x61c   : > { %5066 = dma.done.wait (%p4140_p11), %s3522_s28, 1024  }
 0x61d   : > { %5068 = vsyncadd (%p4140_p11), %s3522_s28, 4294966272  ;;  %p26_p7 = scmp.ge.s32.totalorder %s5237_s14, 4   ;;  %s5533_s24 = smov %s5075_s25 }
 0x61e   : > { %s5534_s25 = smov %s5079_s26  ;;  %s5535_s26 = smov %s5248_s19 }
 0x61f   : > { %s5536_s27 = smov %s5237_s14  ;;  %28 = sbr.rel (!%p26_p7) target bundleno = 12 (0xc), region = 133 }
 0x624   :  { %3536 = vsyncpa [#allocation3], 1 }
 0x625   :  { %3538 = vsyncpa [#allocation3 + $0x1], 1 }
 0x626   :  { %3539 = vsyncpa [#allocation6], 1 }
 0x627   :  { %3540 = vsyncpa [#allocation9], 1 }
 0x628   :  { %3541 = vsyncpa [#allocation4], 1 }
 0x629   :  { %3543 = vsyncpa [#allocation4 + $0x1], 1 }
 0x62a   :  { %3544 = vsyncpa [#allocation13], 1 }
 0x62b   :  { %3546 = vsyncpa [#allocation13 + $0x1], 1 }

</bundles_post_ra>
